<compile_context>
chip_gen: v5e
topology: v5e:2x2
jax: 0.10.0
libtpu: 0.0.40
codegen_flags: <defaults>
</compile_context>

<pallas_src>
import math
import functools

import jax
import jax.numpy as jnp
from jax import lax
from jax.experimental import pallas as pl
from jax.experimental.pallas import tpu as pltpu

NEG_INF = -1e9
LN_EPS = 1e-5
# Set to jnp.bfloat16 on v6e/v7x for ~2x MXU throughput (accumulation stays f32).
# Kept f32 by default to match PyTorch numerics exactly.
MXU_DTYPE = jnp.float32


def _round_up(x, m):
    return ((x + m - 1) // m) * m


def _tile_rows(m, target=256):
    return m if m <= target else target


def _tile_cols(n, target=512):
    return n if n <= target else target


# ----------------------------- Pallas kernels -----------------------------

def _linear_kernel(x_ref, w_ref, b_ref, o_ref, *, activation):
    x = x_ref[...].astype(MXU_DTYPE)
    w = w_ref[...].astype(MXU_DTYPE)
    y = jnp.dot(x, w, preferred_element_type=jnp.float32) + b_ref[...]
    if activation == "relu":
        y = jnp.maximum(y, 0.0)
    o_ref[...] = y


def linear2d(x, w, b, activation=None):
    """y = x @ w + b (optionally ReLU). x:(M,K) w:(K,N) b:(N,) -> (M,N).
    Tiled over M (rows) and N (output columns); K kept resident per block."""
    M, K = x.shape
    N = w.shape[1]
    tm = _tile_rows(M)
    tn = _tile_cols(N)
    kern = functools.partial(_linear_kernel, activation=activation)
    return pl.pallas_call(
        kern,
        grid=(pl.cdiv(M, tm), pl.cdiv(N, tn)),
        out_shape=jax.ShapeDtypeStruct((M, N), jnp.float32),
        in_specs=[
            pl.BlockSpec((tm, K), lambda i, j: (i, 0)),
            pl.BlockSpec((K, tn), lambda i, j: (0, j)),
            pl.BlockSpec((1, tn), lambda i, j: (0, j)),
        ],
        out_specs=pl.BlockSpec((tm, tn), lambda i, j: (i, j)),
        compiler_params=pltpu.CompilerParams(
            dimension_semantics=("parallel", "parallel")),
    )(x, w, b.reshape(1, N))


def _ln_kernel(x_ref, g_ref, b_ref, o_ref):
    x = x_ref[...]
    mu = jnp.mean(x, axis=-1, keepdims=True)
    var = jnp.mean((x - mu) * (x - mu), axis=-1, keepdims=True)
    o_ref[...] = (x - mu) * lax.rsqrt(var + LN_EPS) * g_ref[...] + b_ref[...]


def layernorm3d(x, gamma, beta):
    L, B, E = x.shape
    M = L * B
    tm = _tile_rows(M, 512)
    out = pl.pallas_call(
        _ln_kernel,
        grid=(pl.cdiv(M, tm),),
        out_shape=jax.ShapeDtypeStruct((M, E), jnp.float32),
        in_specs=[
            pl.BlockSpec((tm, E), lambda i: (i, 0)),
            pl.BlockSpec((1, E), lambda i: (0, 0)),
            pl.BlockSpec((1, E), lambda i: (0, 0)),
        ],
        out_specs=pl.BlockSpec((tm, E), lambda i: (i, 0)),
        compiler_params=pltpu.CompilerParams(dimension_semantics=("parallel",)),
    )(x.reshape(M, E), gamma.reshape(1, E), beta.reshape(1, E))
    return out.reshape(L, B, E)


def _proj_add_ln_kernel(a_ref, x_ref, w_ref, b_ref, g_ref, bln_ref, o_ref):
    # LayerNorm(x + a @ w + b) : attention output projection fused with the
    # residual add and the post-attention LayerNorm.
    y = jnp.dot(a_ref[...].astype(MXU_DTYPE), w_ref[...].astype(MXU_DTYPE),
                preferred_element_type=jnp.float32) + b_ref[...]
    r = x_ref[...] + y
    mu = jnp.mean(r, axis=-1, keepdims=True)
    var = jnp.mean((r - mu) * (r - mu), axis=-1, keepdims=True)
    o_ref[...] = (r - mu) * lax.rsqrt(var + LN_EPS) * g_ref[...] + bln_ref[...]


def proj_add_ln(a, x, w, b, gamma, beta):
    """LayerNorm(x + a @ w + b). a,x:(M,E) w:(E,E)."""
    M, E = a.shape
    tm = _tile_rows(M)
    return pl.pallas_call(
        _proj_add_ln_kernel,
        grid=(pl.cdiv(M, tm),),
        out_shape=jax.ShapeDtypeStruct((M, E), jnp.float32),
        in_specs=[
            pl.BlockSpec((tm, E), lambda i: (i, 0)),
            pl.BlockSpec((tm, E), lambda i: (i, 0)),
            pl.BlockSpec((E, E), lambda i: (0, 0)),
            pl.BlockSpec((1, E), lambda i: (0, 0)),
            pl.BlockSpec((1, E), lambda i: (0, 0)),
            pl.BlockSpec((1, E), lambda i: (0, 0)),
        ],
        out_specs=pl.BlockSpec((tm, E), lambda i: (i, 0)),
        compiler_params=pltpu.CompilerParams(dimension_semantics=("parallel",)),
    )(a, x, w, b.reshape(1, E), gamma.reshape(1, E), beta.reshape(1, E))


def _ffn_add_ln_kernel(x_ref, w1_ref, b1_ref, w2_ref, b2_ref, g_ref, b_ref, o_ref):
    x = x_ref[...]
    h = jnp.dot(x.astype(MXU_DTYPE), w1_ref[...].astype(MXU_DTYPE),
                preferred_element_type=jnp.float32) + b1_ref[...]
    h = jnp.maximum(h, 0.0)
    y = jnp.dot(h.astype(MXU_DTYPE), w2_ref[...].astype(MXU_DTYPE),
                preferred_element_type=jnp.float32) + b2_ref[...]
    r = x + y
    mu = jnp.mean(r, axis=-1, keepdims=True)
    var = jnp.mean((r - mu) * (r - mu), axis=-1, keepdims=True)
    o_ref[...] = (r - mu) * lax.rsqrt(var + LN_EPS) * g_ref[...] + b_ref[...]


def ffn_add_ln(x, w1, b1, w2, b2, gamma, beta):
    """LayerNorm(x + relu(x@w1+b1)@w2 + b2), fully fused in one kernel."""
    L, B, E = x.shape
    F = w1.shape[1]
    M = L * B
    tm = _tile_rows(M)
    out = pl.pallas_call(
        _ffn_add_ln_kernel,
        grid=(pl.cdiv(M, tm),),
        out_shape=jax.ShapeDtypeStruct((M, E), jnp.float32),
        in_specs=[
            pl.BlockSpec((tm, E), lambda i: (i, 0)),
            pl.BlockSpec((E, F), lambda i: (0, 0)),
            pl.BlockSpec((1, F), lambda i: (0, 0)),
            pl.BlockSpec((F, E), lambda i: (0, 0)),
            pl.BlockSpec((1, E), lambda i: (0, 0)),
            pl.BlockSpec((1, E), lambda i: (0, 0)),
            pl.BlockSpec((1, E), lambda i: (0, 0)),
        ],
        out_specs=pl.BlockSpec((tm, E), lambda i: (i, 0)),
        compiler_params=pltpu.CompilerParams(dimension_semantics=("parallel",)),
    )(x.reshape(M, E), w1, b1.reshape(1, F), w2, b2.reshape(1, E),
      gamma.reshape(1, E), beta.reshape(1, E))
    return out.reshape(L, B, E)


def _ln_linear_kernel(x_ref, g_ref, b_ref, w_ref, bias_ref, o_ref):
    # generator fused with the final decoder LayerNorm:
    #   (LayerNorm(x)) @ w + bias
    x = x_ref[...]
    mu = jnp.mean(x, axis=-1, keepdims=True)
    var = jnp.mean((x - mu) * (x - mu), axis=-1, keepdims=True)
    xn = (x - mu) * lax.rsqrt(var + LN_EPS) * g_ref[...] + b_ref[...]
    o_ref[...] = jnp.dot(xn.astype(MXU_DTYPE), w_ref[...].astype(MXU_DTYPE),
                         preferred_element_type=jnp.float32) + bias_ref[...]


def ln_linear3d(x, gamma, beta, w, bias):
    """LayerNorm(x) @ w + bias, fused. x:(L,B,E), w:(E,N) -> (L,B,N)."""
    L, B, E = x.shape
    N = w.shape[1]
    M = L * B
    tm = _tile_rows(M)
    tn = _tile_cols(N)
    out = pl.pallas_call(
        _ln_linear_kernel,
        grid=(pl.cdiv(M, tm), pl.cdiv(N, tn)),
        out_shape=jax.ShapeDtypeStruct((M, N), jnp.float32),
        in_specs=[
            pl.BlockSpec((tm, E), lambda i, j: (i, 0)),
            pl.BlockSpec((1, E), lambda i, j: (0, 0)),
            pl.BlockSpec((1, E), lambda i, j: (0, 0)),
            pl.BlockSpec((E, tn), lambda i, j: (0, j)),
            pl.BlockSpec((1, tn), lambda i, j: (0, j)),
        ],
        out_specs=pl.BlockSpec((tm, tn), lambda i, j: (i, j)),
        compiler_params=pltpu.CompilerParams(
            dimension_semantics=("parallel", "parallel")),
    )(x.reshape(M, E), gamma.reshape(1, E), beta.reshape(1, E), w,
      bias.reshape(1, N))
    return out.reshape(L, B, N)


def _article_emb_kernel(f_ref, w1_ref, b1_ref, w2_ref, b2_ref, t_ref, o_ref):
    h = jnp.dot(f_ref[...].astype(MXU_DTYPE), w1_ref[...].astype(MXU_DTYPE),
                preferred_element_type=jnp.float32) + b1_ref[...]
    y = jnp.dot(h.astype(MXU_DTYPE), w2_ref[...].astype(MXU_DTYPE),
                preferred_element_type=jnp.float32) + b2_ref[...]
    o_ref[...] = y + t_ref[...]


def article_embed(params, tok_emb, feat):
    """(feat @ w1 + b1) @ w2 + b2 + tok_emb, fused in one kernel."""
    L, B, Fd = feat.shape
    E = tok_emb.shape[-1]
    H2 = params["art_w1"].shape[1]
    M = L * B
    tm = _tile_rows(M)
    out = pl.pallas_call(
        _article_emb_kernel,
        grid=(pl.cdiv(M, tm),),
        out_shape=jax.ShapeDtypeStruct((M, E), jnp.float32),
        in_specs=[
            pl.BlockSpec((tm, Fd), lambda i: (i, 0)),
            pl.BlockSpec((Fd, H2), lambda i: (0, 0)),
            pl.BlockSpec((1, H2), lambda i: (0, 0)),
            pl.BlockSpec((H2, E), lambda i: (0, 0)),
            pl.BlockSpec((1, E), lambda i: (0, 0)),
            pl.BlockSpec((tm, E), lambda i: (i, 0)),
        ],
        out_specs=pl.BlockSpec((tm, E), lambda i: (i, 0)),
        compiler_params=pltpu.CompilerParams(dimension_semantics=("parallel",)),
    )(feat.reshape(M, Fd), params["art_w1"], params["art_b1"].reshape(1, H2),
      params["art_w2"], params["art_b2"].reshape(1, E), tok_emb.reshape(M, E))
    return out.reshape(L, B, E)


def _attn_kernel(q_ref, k_ref, v_ref, mask_ref, kpm_ref, o_ref, *, scale):
    # q_ref/k_ref/v_ref blocks: (1, H, L, Dh) -> process all heads of one batch element.
    q = q_ref[0].astype(MXU_DTYPE)          # (H, Lq, Dh)
    k = k_ref[0].astype(MXU_DTYPE)          # (H, Lk, Dh)
    v = v_ref[0].astype(MXU_DTYPE)          # (H, Lk, Dh)
    # batched QK^T contracting last dims (no explicit transpose)
    s = lax.dot_general(q, k, (((2,), (2,)), ((0,), (0,))),
                        preferred_element_type=jnp.float32) * scale   # (H, Lq, Lk)
    s = s + mask_ref[...] + kpm_ref[0]      # additive masks applied in-kernel
    m = jnp.max(s, axis=-1, keepdims=True)
    p = jnp.exp(s - m)
    denom = jnp.sum(p, axis=-1, keepdims=True)
    p = p * pl.reciprocal(denom, approx=True)
    o = lax.dot_general(p.astype(MXU_DTYPE), v, (((2,), (1,)), ((0,), (0,))),
                        preferred_element_type=jnp.float32)           # (H, Lq, Dh)
    o_ref[0] = o
    # TODO(synk): for long sequences convert to flash-style Lk tiling with
    # online-softmax scratch instead of materializing the full (Lq, Lk) scores.


def attention(q, k, v, mask_bias, kpm_bias, scale):
    """q,k,v: (B, H, L, Dh); mask_bias: (Lq, Lk); kpm_bias: (B, 1, Lk)."""
    B, H, Lq, Dh = q.shape
    Lk = k.shape[2]
    kern = functools.partial(_attn_kernel, scale=scale)
    return pl.pallas_call(
        kern,
        grid=(B,),
        out_shape=jax.ShapeDtypeStruct((B, H, Lq, Dh), jnp.float32),
        in_specs=[
            pl.BlockSpec((1, H, Lq, Dh), lambda b: (b, 0, 0, 0)),
            pl.BlockSpec((1, H, Lk, Dh), lambda b: (b, 0, 0, 0)),
            pl.BlockSpec((1, H, Lk, Dh), lambda b: (b, 0, 0, 0)),
            pl.BlockSpec((Lq, Lk), lambda b: (0, 0)),     # resident across grid steps
            pl.BlockSpec((1, 1, Lk), lambda b: (b, 0, 0)),
        ],
        out_specs=pl.BlockSpec((1, H, Lq, Dh), lambda b: (b, 0, 0, 0)),
        compiler_params=pltpu.CompilerParams(dimension_semantics=("parallel",)),
    )(q, k, v, mask_bias, kpm_bias)


# ----------------------------- glue (plain JAX) -----------------------------

def mha_self(x, mask_bias, kpm_bias, p, ln_g, ln_b, nhead):
    """Self-attention sublayer: fused QKV projection, in-kernel masked softmax,
    fused (out-proj + residual + LayerNorm)."""
    L, B, E = x.shape
    Dh = E // nhead
    x2 = x.reshape(L * B, E)
    qkv = linear2d(x2, p["wqkv"], p["bqkv"])                            # (L*B, 3E)
    qkv = qkv.reshape(L, B, 3, nhead, Dh).transpose(2, 1, 3, 0, 4)      # (3, B, H, L, Dh)
    o = attention(qkv[0], qkv[1], qkv[2], mask_bias, kpm_bias,
                  scale=1.0 / math.sqrt(Dh))                            # (B, H, L, Dh)
    o = o.transpose(2, 0, 1, 3).reshape(L * B, E)
    out = proj_add_ln(o, x2, p["wo"], p["bo"], ln_g, ln_b)
    return out.reshape(L, B, E)


def mha_cross(xq, mem, mask_bias, kpm_bias, p, ln_g, ln_b, nhead):
    """Cross-attention sublayer: Q from decoder, fused KV projection from memory,
    fused (out-proj + residual + LayerNorm)."""
    Lq, B, E = xq.shape
    Lk = mem.shape[0]
    Dh = E // nhead
    xq2 = xq.reshape(Lq * B, E)
    q = linear2d(xq2, p["wq"], p["bq"])
    q = q.reshape(Lq, B, nhead, Dh).transpose(1, 2, 0, 3)               # (B, H, Lq, Dh)
    kv = linear2d(mem.reshape(Lk * B, E), p["wkv"], p["bkv"])           # (Lk*B, 2E)
    kv = kv.reshape(Lk, B, 2, nhead, Dh).transpose(2, 1, 3, 0, 4)       # (2, B, H, Lk, Dh)
    o = attention(q, kv[0], kv[1], mask_bias, kpm_bias,
                  scale=1.0 / math.sqrt(Dh))
    o = o.transpose(2, 0, 1, 3).reshape(Lq * B, E)
    out = proj_add_ln(o, xq2, p["wo"], p["bo"], ln_g, ln_b)
    return out.reshape(Lq, B, E)


def encoder_layer(p, x, src_mb, src_kb, nhead):
    x = mha_self(x, src_mb, src_kb, p["self"], p["ln1_g"], p["ln1_b"], nhead)
    x = ffn_add_ln(x, p["w1"], p["b1"], p["w2"], p["b2"], p["ln2_g"], p["ln2_b"])
    return x


def decoder_layer(p, x, memory, tgt_mb, tgt_kb, mem_mb, mem_kb, nhead):
    x = mha_self(x, tgt_mb, tgt_kb, p["self"], p["ln1_g"], p["ln1_b"], nhead)
    x = mha_cross(x, memory, mem_mb, mem_kb, p["cross"], p["ln2_g"], p["ln2_b"], nhead)
    x = ffn_add_ln(x, p["w1"], p["b1"], p["w2"], p["b2"], p["ln3_g"], p["ln3_b"])
    return x


def token_embed(params, tokens):
    # TODO(synk): embedding gather kept in plain JAX (no clean dense Pallas equivalent
    # at this size; a DMA-gather kernel would be needed for a big vocab).
    table = params["tok_table"]
    return table[tokens] * math.sqrt(table.shape[1])


def seq2seq_forward(params, src, tgt, src_feat, tgt_feat, src_mask, tgt_mask,
                    src_padding_mask, tgt_padding_mask, memory_key_padding_mask,
                    *, nhead, n_articles):
    # TODO(synk): dropout layers are eval-mode identity here (no stochastic dropout).
    S, B = src.shape
    T = tgt.shape[0]

    src_emb = article_embed(params, token_embed(params, src), src_feat)
    tgt_emb = article_embed(params, token_embed(params, tgt), tgt_feat)

    # tiny additive mask tensors, applied inside the attention kernel
    # (no (B, H, Lq, Lk) bias materialized in HBM)
    def to_mask(m, Lq, Lk):
        return jnp.zeros((Lq, Lk), jnp.float32) if m is None else m.astype(jnp.float32)

    def to_kpm(kpm, Lk):
        if kpm is None:
            return jnp.zeros((B, 1, Lk), jnp.float32)
        return jnp.where(kpm, NEG_INF, 0.0).astype(jnp.float32).reshape(B, 1, Lk)

    src_mb = to_mask(src_mask, S, S)
    tgt_mb = to_mask(tgt_mask, T, T)
    mem_mb = to_mask(None, T, S)          # memory_mask is None in the PyTorch forward
    src_kb = to_kpm(src_padding_mask, S)
    tgt_kb = to_kpm(tgt_padding_mask, T)
    mem_kb = to_kpm(memory_key_padding_mask, S)

    x = src_emb
    for lp in params["enc_layers"]:
        x = encoder_layer(lp, x, src_mb, src_kb, nhead)
    memory = layernorm3d(x, params["enc_norm_g"], params["enc_norm_b"])

    y = tgt_emb
    for lp in params["dec_layers"]:
        y = decoder_layer(lp, y, memory, tgt_mb, tgt_kb, mem_mb, mem_kb, nhead)

    # final decoder LayerNorm fused with the generator matmul; generator weights
    # are padded to a 128-multiple output dim (lane-dense stores), sliced back here
    logits = ln_linear3d(y, params["dec_norm_g"], params["dec_norm_b"],
                         params["gen_w"], params["gen_b"])
    return logits[..., :n_articles]       # raw logits (T, B, n_articles)


# ----------------------------- parameter init -----------------------------

def init_linear(key, fan_in, fan_out):
    kw, kb = jax.random.split(key)
    bound = 1.0 / math.sqrt(fan_in)
    w = jax.random.uniform(kw, (fan_in, fan_out), jnp.float32, -bound, bound)
    b = jax.random.uniform(kb, (fan_out,), jnp.float32, -bound, bound)
    return w, b


def init_mha(key, E):
    ks = jax.random.split(key, 4)
    wq, bq = init_linear(ks[0], E, E)
    wk, bk = init_linear(ks[1], E, E)
    wv, bv = init_linear(ks[2], E, E)
    wo, bo = init_linear(ks[3], E, E)
    return dict(
        wqkv=jnp.concatenate([wq, wk, wv], axis=1),   # fused QKV projection
        bqkv=jnp.concatenate([bq, bk, bv]),
        wq=wq, bq=bq,
        wkv=jnp.concatenate([wk, wv], axis=1),        # fused KV (cross-attention)
        bkv=jnp.concatenate([bk, bv]),
        wo=wo, bo=bo,
    )


def init_enc_layer(key, E, F):
    ks = jax.random.split(key, 3)
    p = dict(self=init_mha(ks[0], E))
    p["w1"], p["b1"] = init_linear(ks[1], E, F)
    p["w2"], p["b2"] = init_linear(ks[2], F, E)
    for i in (1, 2):
        p[f"ln{i}_g"] = jnp.ones((E,), jnp.float32)
        p[f"ln{i}_b"] = jnp.zeros((E,), jnp.float32)
    return p


def init_dec_layer(key, E, F):
    ks = jax.random.split(key, 4)
    p = dict(self=init_mha(ks[0], E), cross=init_mha(ks[1], E))
    p["w1"], p["b1"] = init_linear(ks[2], E, F)
    p["w2"], p["b2"] = init_linear(ks[3], F, E)
    for i in (1, 2, 3):
        p[f"ln{i}_g"] = jnp.ones((E,), jnp.float32)
        p[f"ln{i}_b"] = jnp.zeros((E,), jnp.float32)
    return p


def init_params(key, num_enc, num_dec, E, nhead, n_articles, feat_dim, F):
    ks = jax.random.split(key, num_enc + num_dec + 4)
    params = {}
    params["tok_table"] = jax.random.normal(ks[0], (n_articles, E), jnp.float32)
    params["art_w1"], params["art_b1"] = init_linear(ks[1], feat_dim, 2 * E)
    params["art_w2"], params["art_b2"] = init_linear(ks[2], 2 * E, E)
    gw, gb = init_linear(ks[3], E, n_articles)
    n_pad = _round_up(n_articles, 128)                 # lane-dense generator output
    params["gen_w"] = jnp.pad(gw, ((0, 0), (0, n_pad - n_articles)))
    params["gen_b"] = jnp.pad(gb, (0, n_pad - n_articles))
    params["enc_norm_g"] = jnp.ones((E,), jnp.float32)
    params["enc_norm_b"] = jnp.zeros((E,), jnp.float32)
    params["dec_norm_g"] = jnp.ones((E,), jnp.float32)
    params["dec_norm_b"] = jnp.zeros((E,), jnp.float32)
    params["enc_layers"] = [init_enc_layer(ks[4 + i], E, F) for i in range(num_enc)]
    params["dec_layers"] = [init_dec_layer(ks[4 + num_enc + i], E, F)
                            for i in range(num_dec)]
    return params


# ----------------------------- main -----------------------------

if __name__ == "__main__":
    S, T, B = 8, 8, 2
    E, NHEAD = 32, 4
    NUM_ENC, NUM_DEC = 2, 2
    N_ARTICLES, FEAT_DIM, FFN = 50, 12, 64

    root = jax.random.PRNGKey(0)
    kp, k1, k2, k3, k4 = jax.random.split(root, 5)

    params = init_params(kp, NUM_ENC, NUM_DEC, E, NHEAD, N_ARTICLES, FEAT_DIM, FFN)

    src = jax.random.randint(k1, (S, B), 0, N_ARTICLES)
    tgt = jax.random.randint(k2, (T, B), 0, N_ARTICLES)
    src_feat = jax.random.normal(k3, (S, B, FEAT_DIM), jnp.float32)
    tgt_feat = jax.random.normal(k4, (T, B, FEAT_DIM), jnp.float32)

    src_mask = jnp.zeros((S, S), jnp.float32)
    tgt_mask = jnp.where(jnp.triu(jnp.ones((T, T), bool), k=1),
                         NEG_INF, 0.0).astype(jnp.float32)
    src_padding_mask = jnp.zeros((B, S), bool)
    tgt_padding_mask = jnp.zeros((B, T), bool)
    memory_key_padding_mask = jnp.zeros((B, S), bool)

    fwd = jax.jit(functools.partial(seq2seq_forward, nhead=NHEAD,
                                    n_articles=N_ARTICLES))
    out = fwd(params, src, tgt, src_feat, tgt_feat, src_mask, tgt_mask,
              src_padding_mask, tgt_padding_mask, memory_key_padding_mask)
    out = jax.block_until_ready(out)
    assert out.shape == (T, B, N_ARTICLES), out.shape
    assert bool(jnp.all(jnp.isfinite(out)))
    print("KERNEL_OK")
</pallas_src>

<mosaic_0001>
module attributes {stable_mosaic.version = 11 : i64} {
  func.func @_linear_kernel(%arg0: i32, %arg1: i32, %arg2: memref<16x32xf32, #tpu.memory_space<vmem>>, %arg3: memref<32x96xf32, #tpu.memory_space<vmem>>, %arg4: memref<1x96xf32, #tpu.memory_space<vmem>>, %arg5: memref<16x96xf32, #tpu.memory_space<vmem>>) attributes {dimension_semantics = [#tpu.dimension_semantics<parallel>, #tpu.dimension_semantics<parallel>], iteration_bounds = array<i64: 1, 1>, scalar_prefetch = 0 : i64, scratch_operands = 0 : i64, tpu.core_type = #tpu.core_type<tc>, window_params = [{transform_indices = @transform_0, window_bounds = array<i64: 16, 32>}, {transform_indices = @transform_1, window_bounds = array<i64: 32, 96>}, {transform_indices = @transform_2, window_bounds = array<i64: 1, 96>}, {transform_indices = @transform_3, window_bounds = array<i64: 16, 96>}]} {
    %c0 = arith.constant 0 : index
    %c0_0 = arith.constant 0 : index
    %0 = vector.load %arg2[%c0, %c0_0] : memref<16x32xf32, #tpu.memory_space<vmem>>, vector<16x32xf32>
    %c0_1 = arith.constant 0 : index
    %c0_2 = arith.constant 0 : index
    %1 = vector.load %arg3[%c0_1, %c0_2] : memref<32x96xf32, #tpu.memory_space<vmem>>, vector<32x96xf32>
    %cst = arith.constant dense<0.000000e+00> : vector<16x96xf32>
    %2 = tpu.matmul %0, %1, %cst {dimension_numbers = #tpu.dot_dimension_numbers<[1], [0], [0], [1], [0, 0, 1, 1], [], []>} : vector<16x32xf32>, vector<32x96xf32>, vector<16x96xf32> -> vector<16x96xf32>
    %c0_3 = arith.constant 0 : index
    %c0_4 = arith.constant 0 : index
    %3 = vector.load %arg4[%c0_3, %c0_4] : memref<1x96xf32, #tpu.memory_space<vmem>>, vector<1x96xf32>
    %4 = vector.broadcast %3 : vector<1x96xf32> to vector<16x96xf32>
    %5 = arith.addf %2, %4 : vector<16x96xf32>
    %c0_5 = arith.constant 0 : index
    %c0_6 = arith.constant 0 : index
    %6 = vector.load %arg5[%c0_5, %c0_6] : memref<16x96xf32, #tpu.memory_space<vmem>>, vector<16x96xf32>
    tpu.vector_store %arg5[%c0_5, %c0_6], %5 {strides = array<i32>} : memref<16x96xf32, #tpu.memory_space<vmem>>, vector<16x96xf32>,
    return
  }
  func.func @transform_0(%arg0: i32, %arg1: i32) -> (i32, i32) {
    %c0_i32 = arith.constant 0 : i32
    %c0_i32_0 = arith.constant 0 : i32
    return %arg0, %c0_i32 : i32, i32
  }
  func.func @transform_1(%arg0: i32, %arg1: i32) -> (i32, i32) {
    %c0_i32 = arith.constant 0 : i32
    %c0_i32_0 = arith.constant 0 : i32
    return %c0_i32, %arg1 : i32, i32
  }
  func.func @transform_2(%arg0: i32, %arg1: i32) -> (i32, i32) {
    %c0_i32 = arith.constant 0 : i32
    %c0_i32_0 = arith.constant 0 : i32
    return %c0_i32, %arg1 : i32, i32
  }
  func.func @transform_3(%arg0: i32, %arg1: i32) -> (i32, i32) {
    %c0_i32 = arith.constant 0 : i32
    return %arg0, %arg1 : i32, i32
  }
}

module attributes {stable_mosaic.version = 11 : i64} {
  func.func @_article_emb_kernel(%arg0: i32, %arg1: memref<16x12xf32, #tpu.memory_space<vmem>>, %arg2: memref<12x64xf32, #tpu.memory_space<vmem>>, %arg3: memref<1x64xf32, #tpu.memory_space<vmem>>, %arg4: memref<64x32xf32, #tpu.memory_space<vmem>>, %arg5: memref<1x32xf32, #tpu.memory_space<vmem>>, %arg6: memref<16x32xf32, #tpu.memory_space<vmem>>, %arg7: memref<16x32xf32, #tpu.memory_space<vmem>>) attributes {dimension_semantics = [#tpu.dimension_semantics<parallel>], iteration_bounds = array<i64: 1>, scalar_prefetch = 0 : i64, scratch_operands = 0 : i64, tpu.core_type = #tpu.core_type<tc>, window_params = [{transform_indices = @transform_0, window_bounds = array<i64: 16, 12>}, {pipeline_mode = #tpu.pipeline_mode<synchronous>, transform_indices = @transform_1, window_bounds = array<i64: 12, 64>}, {pipeline_mode = #tpu.pipeline_mode<synchronous>, transform_indices = @transform_2, window_bounds = array<i64: 1, 64>}, {pipeline_mode = #tpu.pipeline_mode<synchronous>, transform_indices = @transform_3, window_bounds = array<i64: 64, 32>}, {pipeline_mode = #tpu.pipeline_mode<synchronous>, transform_indices = @transform_4, window_bounds = array<i64: 1, 32>}, {transform_indices = @transform_5, window_bounds = array<i64: 16, 32>}, {transform_indices = @transform_6, window_bounds = array<i64: 16, 32>}]} {
    %c0 = arith.constant 0 : index
    %c0_0 = arith.constant 0 : index
    %0 = vector.load %arg1[%c0, %c0_0] : memref<16x12xf32, #tpu.memory_space<vmem>>, vector<16x12xf32>
    %c0_1 = arith.constant 0 : index
    %c0_2 = arith.constant 0 : index
    %1 = vector.load %arg2[%c0_1, %c0_2] : memref<12x64xf32, #tpu.memory_space<vmem>>, vector<12x64xf32>
    %cst = arith.constant dense<0.000000e+00> : vector<16x64xf32>
    %2 = tpu.matmul %0, %1, %cst {dimension_numbers = #tpu.dot_dimension_numbers<[1], [0], [0], [1], [0, 0, 1, 1], [], []>} : vector<16x12xf32>, vector<12x64xf32>, vector<16x64xf32> -> vector<16x64xf32>
    %c0_3 = arith.constant 0 : index
    %c0_4 = arith.constant 0 : index
    %3 = vector.load %arg3[%c0_3, %c0_4] : memref<1x64xf32, #tpu.memory_space<vmem>>, vector<1x64xf32>
    %4 = vector.broadcast %3 : vector<1x64xf32> to vector<16x64xf32>
    %5 = arith.addf %2, %4 : vector<16x64xf32>
    %c0_5 = arith.constant 0 : index
    %c0_6 = arith.constant 0 : index
    %6 = vector.load %arg4[%c0_5, %c0_6] : memref<64x32xf32, #tpu.memory_space<vmem>>, vector<64x32xf32>
    %cst_7 = arith.constant dense<0.000000e+00> : vector<16x32xf32>
    %7 = tpu.matmul %5, %6, %cst_7 {dimension_numbers = #tpu.dot_dimension_numbers<[1], [0], [0], [1], [0, 0, 1, 1], [], []>} : vector<16x64xf32>, vector<64x32xf32>, vector<16x32xf32> -> vector<16x32xf32>
    %c0_8 = arith.constant 0 : index
    %c0_9 = arith.constant 0 : index
    %8 = vector.load %arg5[%c0_8, %c0_9] : memref<1x32xf32, #tpu.memory_space<vmem>>, vector<1x32xf32>
    %9 = vector.broadcast %8 : vector<1x32xf32> to vector<16x32xf32>
    %10 = arith.addf %7, %9 : vector<16x32xf32>
    %c0_10 = arith.constant 0 : index
    %c0_11 = arith.constant 0 : index
    %11 = vector.load %arg6[%c0_10, %c0_11] : memref<16x32xf32, #tpu.memory_space<vmem>>, vector<16x32xf32>
    %12 = arith.addf %10, %11 : vector<16x32xf32>
    %c0_12 = arith.constant 0 : index
    %c0_13 = arith.constant 0 : index
    %13 = vector.load %arg7[%c0_12, %c0_13] : memref<16x32xf32, #tpu.memory_space<vmem>>, vector<16x32xf32>
    tpu.vector_store %arg7[%c0_12, %c0_13], %12 {strides = array<i32>} : memref<16x32xf32, #tpu.memory_space<vmem>>, vector<16x32xf32>,
    return
  }
  func.func @transform_0(%arg0: i32) -> (i32, i32) {
    %c0_i32 = arith.constant 0 : i32
    %c0_i32_0 = arith.constant 0 : i32
    return %arg0, %c0_i32 : i32, i32
  }
  func.func @transform_1(%arg0: i32) -> (i32, i32) {
    %c0_i32 = arith.constant 0 : i32
    %c0_i32_0 = arith.constant 0 : i32
    %c0_i32_1 = arith.constant 0 : i32
    return %c0_i32, %c0_i32_0 : i32, i32
  }
  func.func @transform_2(%arg0: i32) -> (i32, i32) {
    %c0_i32 = arith.constant 0 : i32
    %c0_i32_0 = arith.constant 0 : i32
    %c0_i32_1 = arith.constant 0 : i32
    return %c0_i32, %c0_i32_0 : i32, i32
  }
  func.func @transform_3(%arg0: i32) -> (i32, i32) {
    %c0_i32 = arith.constant 0 : i32
    %c0_i32_0 = arith.constant 0 : i32
    %c0_i32_1 = arith.constant 0 : i32
    return %c0_i32, %c0_i32_0 : i32, i32
  }
  func.func @transform_4(%arg0: i32) -> (i32, i32) {
    %c0_i32 = arith.constant 0 : i32
    %c0_i32_0 = arith.constant 0 : i32
    %c0_i32_1 = arith.constant 0 : i32
    return %c0_i32, %c0_i32_0 : i32, i32
  }
  func.func @transform_5(%arg0: i32) -> (i32, i32) {
    %c0_i32 = arith.constant 0 : i32
    %c0_i32_0 = arith.constant 0 : i32
    return %arg0, %c0_i32 : i32, i32
  }
  func.func @transform_6(%arg0: i32) -> (i32, i32) {
    %c0_i32 = arith.constant 0 : i32
    %c0_i32_0 = arith.constant 0 : i32
    return %arg0, %c0_i32 : i32, i32
  }
}

module attributes {stable_mosaic.version = 11 : i64} {
  func.func @_attn_kernel(%arg0: i32, %arg1: memref<1x4x8x8xf32, #tpu.memory_space<vmem>>, %arg2: memref<1x4x8x8xf32, #tpu.memory_space<vmem>>, %arg3: memref<1x4x8x8xf32, #tpu.memory_space<vmem>>, %arg4: memref<8x8xf32, #tpu.memory_space<vmem>>, %arg5: memref<1x1x8xf32, #tpu.memory_space<vmem>>, %arg6: memref<1x4x8x8xf32, #tpu.memory_space<vmem>>) attributes {dimension_semantics = [#tpu.dimension_semantics<parallel>], iteration_bounds = array<i64: 2>, scalar_prefetch = 0 : i64, scratch_operands = 0 : i64, tpu.core_type = #tpu.core_type<tc>, window_params = [{transform_indices = @transform_0, window_bounds = array<i64: 1, 4, 8, 8>}, {transform_indices = @transform_1, window_bounds = array<i64: 1, 4, 8, 8>}, {transform_indices = @transform_2, window_bounds = array<i64: 1, 4, 8, 8>}, {pipeline_mode = #tpu.pipeline_mode<synchronous>, transform_indices = @transform_3, window_bounds = array<i64: 8, 8>}, {transform_indices = @transform_4, window_bounds = array<i64: 1, 1, 8>}, {transform_indices = @transform_5, window_bounds = array<i64: 1, 4, 8, 8>}]} {
    %c0 = arith.constant 0 : index
    %c0_0 = arith.constant 0 : index
    %c0_1 = arith.constant 0 : index
    %c0_2 = arith.constant 0 : index
    %0 = vector.load %arg1[%c0, %c0_0, %c0_1, %c0_2] : memref<1x4x8x8xf32, #tpu.memory_space<vmem>>, vector<1x4x8x8xf32>
    %1 = vector.shape_cast %0 : vector<1x4x8x8xf32> to vector<4x8x8xf32>
    %c0_3 = arith.constant 0 : index
    %c0_4 = arith.constant 0 : index
    %c0_5 = arith.constant 0 : index
    %c0_6 = arith.constant 0 : index
    %2 = vector.load %arg2[%c0_3, %c0_4, %c0_5, %c0_6] : memref<1x4x8x8xf32, #tpu.memory_space<vmem>>, vector<1x4x8x8xf32>
    %3 = vector.shape_cast %2 : vector<1x4x8x8xf32> to vector<4x8x8xf32>
    %c0_7 = arith.constant 0 : index
    %c0_8 = arith.constant 0 : index
    %c0_9 = arith.constant 0 : index
    %c0_10 = arith.constant 0 : index
    %4 = vector.load %arg3[%c0_7, %c0_8, %c0_9, %c0_10] : memref<1x4x8x8xf32, #tpu.memory_space<vmem>>, vector<1x4x8x8xf32>
    %5 = vector.shape_cast %4 : vector<1x4x8x8xf32> to vector<4x8x8xf32>
    %cst = arith.constant dense<0.000000e+00> : vector<4x8x8xf32>
    %6 = tpu.matmul %1, %3, %cst {dimension_numbers = #tpu.dot_dimension_numbers<[2], [2], [1], [1], [0, 0, 0, 1, 1, 1], [0], [0]>} : vector<4x8x8xf32>, vector<4x8x8xf32>, vector<4x8x8xf32> -> vector<4x8x8xf32>
    %cst_11 = arith.constant 0.353553385 : f32
    %7 = vector.broadcast %cst_11 : f32 to vector<4x8x8xf32>
    %8 = arith.mulf %6, %7 : vector<4x8x8xf32>
    %c0_12 = arith.constant 0 : index
    %c0_13 = arith.constant 0 : index
    %9 = vector.load %arg4[%c0_12, %c0_13] : memref<8x8xf32, #tpu.memory_space<vmem>>, vector<8x8xf32>
    %10 = vector.shape_cast %9 : vector<8x8xf32> to vector<1x8x8xf32>
    %11 = vector.broadcast %10 : vector<1x8x8xf32> to vector<4x8x8xf32>
    %12 = arith.addf %8, %11 : vector<4x8x8xf32>
    %c0_14 = arith.constant 0 : index
    %c0_15 = arith.constant 0 : index
    %c0_16 = arith.constant 0 : index
    %13 = vector.load %arg5[%c0_14, %c0_15, %c0_16] : memref<1x1x8xf32, #tpu.memory_space<vmem>>, vector<1x1x8xf32>
    %14 = vector.shape_cast %13 : vector<1x1x8xf32> to vector<1x8xf32>
    %15 = vector.shape_cast %14 : vector<1x8xf32> to vector<1x1x8xf32>
    %16 = vector.broadcast %15 : vector<1x1x8xf32> to vector<4x8x8xf32>
    %17 = arith.addf %12, %16 : vector<4x8x8xf32>
    %cst_17 = arith.constant dense<0xFF800000> : vector<4x8xf32>
    %18 = vector.multi_reduction <maximumf>, %17, %cst_17 [2] : vector<4x8x8xf32> to vector<4x8xf32>
    %19 = vector.shape_cast %18 : vector<4x8xf32> to vector<4x8x1xf32>
    %20 = vector.broadcast %19 : vector<4x8x1xf32> to vector<4x8x8xf32>
    %21 = arith.subf %17, %20 : vector<4x8x8xf32>
    %22 = math.exp %21 : vector<4x8x8xf32>
    %cst_18 = arith.constant dense<0.000000e+00> : vector<4x8xf32>
    %23 = vector.multi_reduction <add>, %22, %cst_18 [2] : vector<4x8x8xf32> to vector<4x8xf32>
    %24 = vector.shape_cast %23 : vector<4x8xf32> to vector<4x8x1xf32>
    %25 = tpu.reciprocal %24 {approx = true} : vector<4x8x1xf32> -> vector<4x8x1xf32>
    %26 = vector.broadcast %25 : vector<4x8x1xf32> to vector<4x8x8xf32>
    %27 = arith.mulf %22, %26 : vector<4x8x8xf32>
    %cst_19 = arith.constant dense<0.000000e+00> : vector<4x8x8xf32>
    %28 = tpu.matmul %27, %5, %cst_19 {dimension_numbers = #tpu.dot_dimension_numbers<[2], [1], [1], [2], [0, 0, 0, 1, 1, 2], [0], [0]>} : vector<4x8x8xf32>, vector<4x8x8xf32>, vector<4x8x8xf32> -> vector<4x8x8xf32>
    %c0_20 = arith.constant 0 : index
    %c0_21 = arith.constant 0 : index
    %c0_22 = arith.constant 0 : index
    %c0_23 = arith.constant 0 : index
    %29 = vector.load %arg6[%c0_20, %c0_21, %c0_22, %c0_23] : memref<1x4x8x8xf32, #tpu.memory_space<vmem>>, vector<1x4x8x8xf32>
    %30 = vector.shape_cast %29 : vector<1x4x8x8xf32> to vector<4x8x8xf32>
    %31 = vector.shape_cast %28 : vector<4x8x8xf32> to vector<1x4x8x8xf32>
    tpu.vector_store %arg6[%c0_20, %c0_21, %c0_22, %c0_23], %31 {strides = array<i32>} : memref<1x4x8x8xf32, #tpu.memory_space<vmem>>, vector<1x4x8x8xf32>,
    return
  }
  func.func @transform_0(%arg0: i32) -> (i32, i32, i32, i32) {
    %c0_i32 = arith.constant 0 : i32
    %c0_i32_0 = arith.constant 0 : i32
    %c0_i32_1 = arith.constant 0 : i32
    %c0_i32_2 = arith.constant 0 : i32
    return %arg0, %c0_i32, %c0_i32_0, %c0_i32_1 : i32, i32, i32, i32
  }
  func.func @transform_1(%arg0: i32) -> (i32, i32, i32, i32) {
    %c0_i32 = arith.constant 0 : i32
    %c0_i32_0 = arith.constant 0 : i32
    %c0_i32_1 = arith.constant 0 : i32
    %c0_i32_2 = arith.constant 0 : i32
    return %arg0, %c0_i32, %c0_i32_0, %c0_i32_1 : i32, i32, i32, i32
  }
  func.func @transform_2(%arg0: i32) -> (i32, i32, i32, i32) {
    %c0_i32 = arith.constant 0 : i32
    %c0_i32_0 = arith.constant 0 : i32
    %c0_i32_1 = arith.constant 0 : i32
    %c0_i32_2 = arith.constant 0 : i32
    return %arg0, %c0_i32, %c0_i32_0, %c0_i32_1 : i32, i32, i32, i32
  }
  func.func @transform_3(%arg0: i32) -> (i32, i32) {
    %c0_i32 = arith.constant 0 : i32
    %c0_i32_0 = arith.constant 0 : i32
    %c0_i32_1 = arith.constant 0 : i32
    return %c0_i32, %c0_i32_0 : i32, i32
  }
  func.func @transform_4(%arg0: i32) -> (i32, i32, i32) {
    %c0_i32 = arith.constant 0 : i32
    %c0_i32_0 = arith.constant 0 : i32
    %c0_i32_1 = arith.constant 0 : i32
    return %arg0, %c0_i32, %c0_i32_0 : i32, i32, i32
  }
  func.func @transform_5(%arg0: i32) -> (i32, i32, i32, i32) {
    %c0_i32 = arith.constant 0 : i32
    %c0_i32_0 = arith.constant 0 : i32
    %c0_i32_1 = arith.constant 0 : i32
    %c0_i32_2 = arith.constant 0 : i32
    return %arg0, %c0_i32, %c0_i32_0, %c0_i32_1 : i32, i32, i32, i32
  }
}

module attributes {stable_mosaic.version = 11 : i64} {
  func.func @_proj_add_ln_kernel(%arg0: i32, %arg1: memref<16x32xf32, #tpu.memory_space<vmem>>, %arg2: memref<16x32xf32, #tpu.memory_space<vmem>>, %arg3: memref<32x32xf32, #tpu.memory_space<vmem>>, %arg4: memref<1x32xf32, #tpu.memory_space<vmem>>, %arg5: memref<1x32xf32, #tpu.memory_space<vmem>>, %arg6: memref<1x32xf32, #tpu.memory_space<vmem>>, %arg7: memref<16x32xf32, #tpu.memory_space<vmem>>) attributes {dimension_semantics = [#tpu.dimension_semantics<parallel>], iteration_bounds = array<i64: 1>, scalar_prefetch = 0 : i64, scratch_operands = 0 : i64, tpu.core_type = #tpu.core_type<tc>, window_params = [{transform_indices = @transform_0, window_bounds = array<i64: 16, 32>}, {transform_indices = @transform_1, window_bounds = array<i64: 16, 32>}, {pipeline_mode = #tpu.pipeline_mode<synchronous>, transform_indices = @transform_2, window_bounds = array<i64: 32, 32>}, {pipeline_mode = #tpu.pipeline_mode<synchronous>, transform_indices = @transform_3, window_bounds = array<i64: 1, 32>}, {pipeline_mode = #tpu.pipeline_mode<synchronous>, transform_indices = @transform_4, window_bounds = array<i64: 1, 32>}, {pipeline_mode = #tpu.pipeline_mode<synchronous>, transform_indices = @transform_5, window_bounds = array<i64: 1, 32>}, {transform_indices = @transform_6, window_bounds = array<i64: 16, 32>}]} {
    %c0 = arith.constant 0 : index
    %c0_0 = arith.constant 0 : index
    %0 = vector.load %arg1[%c0, %c0_0] : memref<16x32xf32, #tpu.memory_space<vmem>>, vector<16x32xf32>
    %c0_1 = arith.constant 0 : index
    %c0_2 = arith.constant 0 : index
    %1 = vector.load %arg3[%c0_1, %c0_2] : memref<32x32xf32, #tpu.memory_space<vmem>>, vector<32x32xf32>
    %cst = arith.constant dense<0.000000e+00> : vector<16x32xf32>
    %2 = tpu.matmul %0, %1, %cst {dimension_numbers = #tpu.dot_dimension_numbers<[1], [0], [0], [1], [0, 0, 1, 1], [], []>} : vector<16x32xf32>, vector<32x32xf32>, vector<16x32xf32> -> vector<16x32xf32>
    %c0_3 = arith.constant 0 : index
    %c0_4 = arith.constant 0 : index
    %3 = vector.load %arg4[%c0_3, %c0_4] : memref<1x32xf32, #tpu.memory_space<vmem>>, vector<1x32xf32>
    %4 = vector.broadcast %3 : vector<1x32xf32> to vector<16x32xf32>
    %5 = arith.addf %2, %4 : vector<16x32xf32>
    %c0_5 = arith.constant 0 : index
    %c0_6 = arith.constant 0 : index
    %6 = vector.load %arg2[%c0_5, %c0_6] : memref<16x32xf32, #tpu.memory_space<vmem>>, vector<16x32xf32>
    %7 = arith.addf %6, %5 : vector<16x32xf32>
    %cst_7 = arith.constant dense<0.000000e+00> : vector<16xf32>
    %8 = vector.multi_reduction <add>, %7, %cst_7 [1] : vector<16x32xf32> to vector<16xf32>
    %9 = vector.shape_cast %8 : vector<16xf32> to vector<16x1xf32>
    %cst_8 = arith.constant 3.200000e+01 : f32
    %10 = vector.broadcast %cst_8 : f32 to vector<16x1xf32>
    %11 = arith.divf %9, %10 : vector<16x1xf32>
    %12 = vector.broadcast %11 : vector<16x1xf32> to vector<16x32xf32>
    %13 = arith.subf %7, %12 : vector<16x32xf32>
    %14 = vector.broadcast %11 : vector<16x1xf32> to vector<16x32xf32>
    %15 = arith.subf %7, %14 : vector<16x32xf32>
    %16 = arith.mulf %13, %15 : vector<16x32xf32>
    %cst_9 = arith.constant dense<0.000000e+00> : vector<16xf32>
    %17 = vector.multi_reduction <add>, %16, %cst_9 [1] : vector<16x32xf32> to vector<16xf32>
    %18 = vector.shape_cast %17 : vector<16xf32> to vector<16x1xf32>
    %cst_10 = arith.constant 3.200000e+01 : f32
    %19 = vector.broadcast %cst_10 : f32 to vector<16x1xf32>
    %20 = arith.divf %18, %19 : vector<16x1xf32>
    %21 = vector.broadcast %11 : vector<16x1xf32> to vector<16x32xf32>
    %22 = arith.subf %7, %21 : vector<16x32xf32>
    %cst_11 = arith.constant 9.99999974E-6 : f32
    %23 = vector.broadcast %cst_11 : f32 to vector<16x1xf32>
    %24 = arith.addf %20, %23 : vector<16x1xf32>
    %25 = math.rsqrt %24 : vector<16x1xf32>
    %26 = vector.broadcast %25 : vector<16x1xf32> to vector<16x32xf32>
    %27 = arith.mulf %22, %26 : vector<16x32xf32>
    %c0_12 = arith.constant 0 : index
    %c0_13 = arith.constant 0 : index
    %28 = vector.load %arg5[%c0_12, %c0_13] : memref<1x32xf32, #tpu.memory_space<vmem>>, vector<1x32xf32>
    %29 = vector.broadcast %28 : vector<1x32xf32> to vector<16x32xf32>
    %30 = arith.mulf %27, %29 : vector<16x32xf32>
    %c0_14 = arith.constant 0 : index
    %c0_15 = arith.constant 0 : index
    %31 = vector.load %arg6[%c0_14, %c0_15] : memref<1x32xf32, #tpu.memory_space<vmem>>, vector<1x32xf32>
    %32 = vector.broadcast %31 : vector<1x32xf32> to vector<16x32xf32>
    %33 = arith.addf %30, %32 : vector<16x32xf32>
    %c0_16 = arith.constant 0 : index
    %c0_17 = arith.constant 0 : index
    %34 = vector.load %arg7[%c0_16, %c0_17] : memref<16x32xf32, #tpu.memory_space<vmem>>, vector<16x32xf32>
    tpu.vector_store %arg7[%c0_16, %c0_17], %33 {strides = array<i32>} : memref<16x32xf32, #tpu.memory_space<vmem>>, vector<16x32xf32>,
    return
  }
  func.func @transform_0(%arg0: i32) -> (i32, i32) {
    %c0_i32 = arith.constant 0 : i32
    %c0_i32_0 = arith.constant 0 : i32
    return %arg0, %c0_i32 : i32, i32
  }
  func.func @transform_1(%arg0: i32) -> (i32, i32) {
    %c0_i32 = arith.constant 0 : i32
    %c0_i32_0 = arith.constant 0 : i32
    return %arg0, %c0_i32 : i32, i32
  }
  func.func @transform_2(%arg0: i32) -> (i32, i32) {
    %c0_i32 = arith.constant 0 : i32
    %c0_i32_0 = arith.constant 0 : i32
    %c0_i32_1 = arith.constant 0 : i32
    return %c0_i32, %c0_i32_0 : i32, i32
  }
  func.func @transform_3(%arg0: i32) -> (i32, i32) {
    %c0_i32 = arith.constant 0 : i32
    %c0_i32_0 = arith.constant 0 : i32
    %c0_i32_1 = arith.constant 0 : i32
    return %c0_i32, %c0_i32_0 : i32, i32
  }
  func.func @transform_4(%arg0: i32) -> (i32, i32) {
    %c0_i32 = arith.constant 0 : i32
    %c0_i32_0 = arith.constant 0 : i32
    %c0_i32_1 = arith.constant 0 : i32
    return %c0_i32, %c0_i32_0 : i32, i32
  }
  func.func @transform_5(%arg0: i32) -> (i32, i32) {
    %c0_i32 = arith.constant 0 : i32
    %c0_i32_0 = arith.constant 0 : i32
    %c0_i32_1 = arith.constant 0 : i32
    return %c0_i32, %c0_i32_0 : i32, i32
  }
  func.func @transform_6(%arg0: i32) -> (i32, i32) {
    %c0_i32 = arith.constant 0 : i32
    %c0_i32_0 = arith.constant 0 : i32
    return %arg0, %c0_i32 : i32, i32
  }
}

module attributes {stable_mosaic.version = 11 : i64} {
  func.func @_linear_kernel(%arg0: i32, %arg1: i32, %arg2: memref<16x32xf32, #tpu.memory_space<vmem>>, %arg3: memref<32x32xf32, #tpu.memory_space<vmem>>, %arg4: memref<1x32xf32, #tpu.memory_space<vmem>>, %arg5: memref<16x32xf32, #tpu.memory_space<vmem>>) attributes {dimension_semantics = [#tpu.dimension_semantics<parallel>, #tpu.dimension_semantics<parallel>], iteration_bounds = array<i64: 1, 1>, scalar_prefetch = 0 : i64, scratch_operands = 0 : i64, tpu.core_type = #tpu.core_type<tc>, window_params = [{transform_indices = @transform_0, window_bounds = array<i64: 16, 32>}, {transform_indices = @transform_1, window_bounds = array<i64: 32, 32>}, {transform_indices = @transform_2, window_bounds = array<i64: 1, 32>}, {transform_indices = @transform_3, window_bounds = array<i64: 16, 32>}]} {
    %c0 = arith.constant 0 : index
    %c0_0 = arith.constant 0 : index
    %0 = vector.load %arg2[%c0, %c0_0] : memref<16x32xf32, #tpu.memory_space<vmem>>, vector<16x32xf32>
    %c0_1 = arith.constant 0 : index
    %c0_2 = arith.constant 0 : index
    %1 = vector.load %arg3[%c0_1, %c0_2] : memref<32x32xf32, #tpu.memory_space<vmem>>, vector<32x32xf32>
    %cst = arith.constant dense<0.000000e+00> : vector<16x32xf32>
    %2 = tpu.matmul %0, %1, %cst {dimension_numbers = #tpu.dot_dimension_numbers<[1], [0], [0], [1], [0, 0, 1, 1], [], []>} : vector<16x32xf32>, vector<32x32xf32>, vector<16x32xf32> -> vector<16x32xf32>
    %c0_3 = arith.constant 0 : index
    %c0_4 = arith.constant 0 : index
    %3 = vector.load %arg4[%c0_3, %c0_4] : memref<1x32xf32, #tpu.memory_space<vmem>>, vector<1x32xf32>
    %4 = vector.broadcast %3 : vector<1x32xf32> to vector<16x32xf32>
    %5 = arith.addf %2, %4 : vector<16x32xf32>
    %c0_5 = arith.constant 0 : index
    %c0_6 = arith.constant 0 : index
    %6 = vector.load %arg5[%c0_5, %c0_6] : memref<16x32xf32, #tpu.memory_space<vmem>>, vector<16x32xf32>
    tpu.vector_store %arg5[%c0_5, %c0_6], %5 {strides = array<i32>} : memref<16x32xf32, #tpu.memory_space<vmem>>, vector<16x32xf32>,
    return
  }
  func.func @transform_0(%arg0: i32, %arg1: i32) -> (i32, i32) {
    %c0_i32 = arith.constant 0 : i32
    %c0_i32_0 = arith.constant 0 : i32
    return %arg0, %c0_i32 : i32, i32
  }
  func.func @transform_1(%arg0: i32, %arg1: i32) -> (i32, i32) {
    %c0_i32 = arith.constant 0 : i32
    %c0_i32_0 = arith.constant 0 : i32
    return %c0_i32, %arg1 : i32, i32
  }
  func.func @transform_2(%arg0: i32, %arg1: i32) -> (i32, i32) {
    %c0_i32 = arith.constant 0 : i32
    %c0_i32_0 = arith.constant 0 : i32
    return %c0_i32, %arg1 : i32, i32
  }
  func.func @transform_3(%arg0: i32, %arg1: i32) -> (i32, i32) {
    %c0_i32 = arith.constant 0 : i32
    return %arg0, %arg1 : i32, i32
  }
}

module attributes {stable_mosaic.version = 11 : i64} {
  func.func @_ffn_add_ln_kernel(%arg0: i32, %arg1: memref<16x32xf32, #tpu.memory_space<vmem>>, %arg2: memref<32x64xf32, #tpu.memory_space<vmem>>, %arg3: memref<1x64xf32, #tpu.memory_space<vmem>>, %arg4: memref<64x32xf32, #tpu.memory_space<vmem>>, %arg5: memref<1x32xf32, #tpu.memory_space<vmem>>, %arg6: memref<1x32xf32, #tpu.memory_space<vmem>>, %arg7: memref<1x32xf32, #tpu.memory_space<vmem>>, %arg8: memref<16x32xf32, #tpu.memory_space<vmem>>) attributes {dimension_semantics = [#tpu.dimension_semantics<parallel>], iteration_bounds = array<i64: 1>, scalar_prefetch = 0 : i64, scratch_operands = 0 : i64, tpu.core_type = #tpu.core_type<tc>, window_params = [{transform_indices = @transform_0, window_bounds = array<i64: 16, 32>}, {pipeline_mode = #tpu.pipeline_mode<synchronous>, transform_indices = @transform_1, window_bounds = array<i64: 32, 64>}, {pipeline_mode = #tpu.pipeline_mode<synchronous>, transform_indices = @transform_2, window_bounds = array<i64: 1, 64>}, {pipeline_mode = #tpu.pipeline_mode<synchronous>, transform_indices = @transform_3, window_bounds = array<i64: 64, 32>}, {pipeline_mode = #tpu.pipeline_mode<synchronous>, transform_indices = @transform_4, window_bounds = array<i64: 1, 32>}, {pipeline_mode = #tpu.pipeline_mode<synchronous>, transform_indices = @transform_5, window_bounds = array<i64: 1, 32>}, {pipeline_mode = #tpu.pipeline_mode<synchronous>, transform_indices = @transform_6, window_bounds = array<i64: 1, 32>}, {transform_indices = @transform_7, window_bounds = array<i64: 16, 32>}]} {
    %c0 = arith.constant 0 : index
    %c0_0 = arith.constant 0 : index
    %0 = vector.load %arg1[%c0, %c0_0] : memref<16x32xf32, #tpu.memory_space<vmem>>, vector<16x32xf32>
    %c0_1 = arith.constant 0 : index
    %c0_2 = arith.constant 0 : index
    %1 = vector.load %arg2[%c0_1, %c0_2] : memref<32x64xf32, #tpu.memory_space<vmem>>, vector<32x64xf32>
    %cst = arith.constant dense<0.000000e+00> : vector<16x64xf32>
    %2 = tpu.matmul %0, %1, %cst {dimension_numbers = #tpu.dot_dimension_numbers<[1], [0], [0], [1], [0, 0, 1, 1], [], []>} : vector<16x32xf32>, vector<32x64xf32>, vector<16x64xf32> -> vector<16x64xf32>
    %c0_3 = arith.constant 0 : index
    %c0_4 = arith.constant 0 : index
    %3 = vector.load %arg3[%c0_3, %c0_4] : memref<1x64xf32, #tpu.memory_space<vmem>>, vector<1x64xf32>
    %4 = vector.broadcast %3 : vector<1x64xf32> to vector<16x64xf32>
    %5 = arith.addf %2, %4 : vector<16x64xf32>
    %cst_5 = arith.constant 0.000000e+00 : f32
    %6 = vector.broadcast %cst_5 : f32 to vector<16x64xf32>
    %7 = arith.maximumf %5, %6 : vector<16x64xf32>
    %c0_6 = arith.constant 0 : index
    %c0_7 = arith.constant 0 : index
    %8 = vector.load %arg4[%c0_6, %c0_7] : memref<64x32xf32, #tpu.memory_space<vmem>>, vector<64x32xf32>
    %cst_8 = arith.constant dense<0.000000e+00> : vector<16x32xf32>
    %9 = tpu.matmul %7, %8, %cst_8 {dimension_numbers = #tpu.dot_dimension_numbers<[1], [0], [0], [1], [0, 0, 1, 1], [], []>} : vector<16x64xf32>, vector<64x32xf32>, vector<16x32xf32> -> vector<16x32xf32>
    %c0_9 = arith.constant 0 : index
    %c0_10 = arith.constant 0 : index
    %10 = vector.load %arg5[%c0_9, %c0_10] : memref<1x32xf32, #tpu.memory_space<vmem>>, vector<1x32xf32>
    %11 = vector.broadcast %10 : vector<1x32xf32> to vector<16x32xf32>
    %12 = arith.addf %9, %11 : vector<16x32xf32>
    %13 = arith.addf %0, %12 : vector<16x32xf32>
    %cst_11 = arith.constant dense<0.000000e+00> : vector<16xf32>
    %14 = vector.multi_reduction <add>, %13, %cst_11 [1] : vector<16x32xf32> to vector<16xf32>
    %15 = vector.shape_cast %14 : vector<16xf32> to vector<16x1xf32>
    %cst_12 = arith.constant 3.200000e+01 : f32
    %16 = vector.broadcast %cst_12 : f32 to vector<16x1xf32>
    %17 = arith.divf %15, %16 : vector<16x1xf32>
    %18 = vector.broadcast %17 : vector<16x1xf32> to vector<16x32xf32>
    %19 = arith.subf %13, %18 : vector<16x32xf32>
    %20 = vector.broadcast %17 : vector<16x1xf32> to vector<16x32xf32>
    %21 = arith.subf %13, %20 : vector<16x32xf32>
    %22 = arith.mulf %19, %21 : vector<16x32xf32>
    %cst_13 = arith.constant dense<0.000000e+00> : vector<16xf32>
    %23 = vector.multi_reduction <add>, %22, %cst_13 [1] : vector<16x32xf32> to vector<16xf32>
    %24 = vector.shape_cast %23 : vector<16xf32> to vector<16x1xf32>
    %cst_14 = arith.constant 3.200000e+01 : f32
    %25 = vector.broadcast %cst_14 : f32 to vector<16x1xf32>
    %26 = arith.divf %24, %25 : vector<16x1xf32>
    %27 = vector.broadcast %17 : vector<16x1xf32> to vector<16x32xf32>
    %28 = arith.subf %13, %27 : vector<16x32xf32>
    %cst_15 = arith.constant 9.99999974E-6 : f32
    %29 = vector.broadcast %cst_15 : f32 to vector<16x1xf32>
    %30 = arith.addf %26, %29 : vector<16x1xf32>
    %31 = math.rsqrt %30 : vector<16x1xf32>
    %32 = vector.broadcast %31 : vector<16x1xf32> to vector<16x32xf32>
    %33 = arith.mulf %28, %32 : vector<16x32xf32>
    %c0_16 = arith.constant 0 : index
    %c0_17 = arith.constant 0 : index
    %34 = vector.load %arg6[%c0_16, %c0_17] : memref<1x32xf32, #tpu.memory_space<vmem>>, vector<1x32xf32>
    %35 = vector.broadcast %34 : vector<1x32xf32> to vector<16x32xf32>
    %36 = arith.mulf %33, %35 : vector<16x32xf32>
    %c0_18 = arith.constant 0 : index
    %c0_19 = arith.constant 0 : index
    %37 = vector.load %arg7[%c0_18, %c0_19] : memref<1x32xf32, #tpu.memory_space<vmem>>, vector<1x32xf32>
    %38 = vector.broadcast %37 : vector<1x32xf32> to vector<16x32xf32>
    %39 = arith.addf %36, %38 : vector<16x32xf32>
    %c0_20 = arith.constant 0 : index
    %c0_21 = arith.constant 0 : index
    %40 = vector.load %arg8[%c0_20, %c0_21] : memref<16x32xf32, #tpu.memory_space<vmem>>, vector<16x32xf32>
    tpu.vector_store %arg8[%c0_20, %c0_21], %39 {strides = array<i32>} : memref<16x32xf32, #tpu.memory_space<vmem>>, vector<16x32xf32>,
    return
  }
  func.func @transform_0(%arg0: i32) -> (i32, i32) {
    %c0_i32 = arith.constant 0 : i32
    %c0_i32_0 = arith.constant 0 : i32
    return %arg0, %c0_i32 : i32, i32
  }
  func.func @transform_1(%arg0: i32) -> (i32, i32) {
    %c0_i32 = arith.constant 0 : i32
    %c0_i32_0 = arith.constant 0 : i32
    %c0_i32_1 = arith.constant 0 : i32
    return %c0_i32, %c0_i32_0 : i32, i32
  }
  func.func @transform_2(%arg0: i32) -> (i32, i32) {
    %c0_i32 = arith.constant 0 : i32
    %c0_i32_0 = arith.constant 0 : i32
    %c0_i32_1 = arith.constant 0 : i32
    return %c0_i32, %c0_i32_0 : i32, i32
  }
  func.func @transform_3(%arg0: i32) -> (i32, i32) {
    %c0_i32 = arith.constant 0 : i32
    %c0_i32_0 = arith.constant 0 : i32
    %c0_i32_1 = arith.constant 0 : i32
    return %c0_i32, %c0_i32_0 : i32, i32
  }
  func.func @transform_4(%arg0: i32) -> (i32, i32) {
    %c0_i32 = arith.constant 0 : i32
    %c0_i32_0 = arith.constant 0 : i32
    %c0_i32_1 = arith.constant 0 : i32
    return %c0_i32, %c0_i32_0 : i32, i32
  }
  func.func @transform_5(%arg0: i32) -> (i32, i32) {
    %c0_i32 = arith.constant 0 : i32
    %c0_i32_0 = arith.constant 0 : i32
    %c0_i32_1 = arith.constant 0 : i32
    return %c0_i32, %c0_i32_0 : i32, i32
  }
  func.func @transform_6(%arg0: i32) -> (i32, i32) {
    %c0_i32 = arith.constant 0 : i32
    %c0_i32_0 = arith.constant 0 : i32
    %c0_i32_1 = arith.constant 0 : i32
    return %c0_i32, %c0_i32_0 : i32, i32
  }
  func.func @transform_7(%arg0: i32) -> (i32, i32) {
    %c0_i32 = arith.constant 0 : i32
    %c0_i32_0 = arith.constant 0 : i32
    return %arg0, %c0_i32 : i32, i32
  }
}

module attributes {stable_mosaic.version = 11 : i64} {
  func.func @_ln_kernel(%arg0: i32, %arg1: memref<16x32xf32, #tpu.memory_space<vmem>>, %arg2: memref<1x32xf32, #tpu.memory_space<vmem>>, %arg3: memref<1x32xf32, #tpu.memory_space<vmem>>, %arg4: memref<16x32xf32, #tpu.memory_space<vmem>>) attributes {dimension_semantics = [#tpu.dimension_semantics<parallel>], iteration_bounds = array<i64: 1>, scalar_prefetch = 0 : i64, scratch_operands = 0 : i64, tpu.core_type = #tpu.core_type<tc>, window_params = [{transform_indices = @transform_0, window_bounds = array<i64: 16, 32>}, {pipeline_mode = #tpu.pipeline_mode<synchronous>, transform_indices = @transform_1, window_bounds = array<i64: 1, 32>}, {pipeline_mode = #tpu.pipeline_mode<synchronous>, transform_indices = @transform_2, window_bounds = array<i64: 1, 32>}, {transform_indices = @transform_3, window_bounds = array<i64: 16, 32>}]} {
    %c0 = arith.constant 0 : index
    %c0_0 = arith.constant 0 : index
    %0 = vector.load %arg1[%c0, %c0_0] : memref<16x32xf32, #tpu.memory_space<vmem>>, vector<16x32xf32>
    %cst = arith.constant dense<0.000000e+00> : vector<16xf32>
    %1 = vector.multi_reduction <add>, %0, %cst [1] : vector<16x32xf32> to vector<16xf32>
    %2 = vector.shape_cast %1 : vector<16xf32> to vector<16x1xf32>
    %cst_1 = arith.constant 3.200000e+01 : f32
    %3 = vector.broadcast %cst_1 : f32 to vector<16x1xf32>
    %4 = arith.divf %2, %3 : vector<16x1xf32>
    %5 = vector.broadcast %4 : vector<16x1xf32> to vector<16x32xf32>
    %6 = arith.subf %0, %5 : vector<16x32xf32>
    %7 = vector.broadcast %4 : vector<16x1xf32> to vector<16x32xf32>
    %8 = arith.subf %0, %7 : vector<16x32xf32>
    %9 = arith.mulf %6, %8 : vector<16x32xf32>
    %cst_2 = arith.constant dense<0.000000e+00> : vector<16xf32>
    %10 = vector.multi_reduction <add>, %9, %cst_2 [1] : vector<16x32xf32> to vector<16xf32>
    %11 = vector.shape_cast %10 : vector<16xf32> to vector<16x1xf32>
    %cst_3 = arith.constant 3.200000e+01 : f32
    %12 = vector.broadcast %cst_3 : f32 to vector<16x1xf32>
    %13 = arith.divf %11, %12 : vector<16x1xf32>
    %14 = vector.broadcast %4 : vector<16x1xf32> to vector<16x32xf32>
    %15 = arith.subf %0, %14 : vector<16x32xf32>
    %cst_4 = arith.constant 9.99999974E-6 : f32
    %16 = vector.broadcast %cst_4 : f32 to vector<16x1xf32>
    %17 = arith.addf %13, %16 : vector<16x1xf32>
    %18 = math.rsqrt %17 : vector<16x1xf32>
    %19 = vector.broadcast %18 : vector<16x1xf32> to vector<16x32xf32>
    %20 = arith.mulf %15, %19 : vector<16x32xf32>
    %c0_5 = arith.constant 0 : index
    %c0_6 = arith.constant 0 : index
    %21 = vector.load %arg2[%c0_5, %c0_6] : memref<1x32xf32, #tpu.memory_space<vmem>>, vector<1x32xf32>
    %22 = vector.broadcast %21 : vector<1x32xf32> to vector<16x32xf32>
    %23 = arith.mulf %20, %22 : vector<16x32xf32>
    %c0_7 = arith.constant 0 : index
    %c0_8 = arith.constant 0 : index
    %24 = vector.load %arg3[%c0_7, %c0_8] : memref<1x32xf32, #tpu.memory_space<vmem>>, vector<1x32xf32>
    %25 = vector.broadcast %24 : vector<1x32xf32> to vector<16x32xf32>
    %26 = arith.addf %23, %25 : vector<16x32xf32>
    %c0_9 = arith.constant 0 : index
    %c0_10 = arith.constant 0 : index
    %27 = vector.load %arg4[%c0_9, %c0_10] : memref<16x32xf32, #tpu.memory_space<vmem>>, vector<16x32xf32>
    tpu.vector_store %arg4[%c0_9, %c0_10], %26 {strides = array<i32>} : memref<16x32xf32, #tpu.memory_space<vmem>>, vector<16x32xf32>,
    return
  }
  func.func @transform_0(%arg0: i32) -> (i32, i32) {
    %c0_i32 = arith.constant 0 : i32
    %c0_i32_0 = arith.constant 0 : i32
    return %arg0, %c0_i32 : i32, i32
  }
  func.func @transform_1(%arg0: i32) -> (i32, i32) {
    %c0_i32 = arith.constant 0 : i32
    %c0_i32_0 = arith.constant 0 : i32
    %c0_i32_1 = arith.constant 0 : i32
    return %c0_i32, %c0_i32_0 : i32, i32
  }
  func.func @transform_2(%arg0: i32) -> (i32, i32) {
    %c0_i32 = arith.constant 0 : i32
    %c0_i32_0 = arith.constant 0 : i32
    %c0_i32_1 = arith.constant 0 : i32
    return %c0_i32, %c0_i32_0 : i32, i32
  }
  func.func @transform_3(%arg0: i32) -> (i32, i32) {
    %c0_i32 = arith.constant 0 : i32
    %c0_i32_0 = arith.constant 0 : i32
    return %arg0, %c0_i32 : i32, i32
  }
}

module attributes {stable_mosaic.version = 11 : i64} {
  func.func @_linear_kernel(%arg0: i32, %arg1: i32, %arg2: memref<16x32xf32, #tpu.memory_space<vmem>>, %arg3: memref<32x64xf32, #tpu.memory_space<vmem>>, %arg4: memref<1x64xf32, #tpu.memory_space<vmem>>, %arg5: memref<16x64xf32, #tpu.memory_space<vmem>>) attributes {dimension_semantics = [#tpu.dimension_semantics<parallel>, #tpu.dimension_semantics<parallel>], iteration_bounds = array<i64: 1, 1>, scalar_prefetch = 0 : i64, scratch_operands = 0 : i64, tpu.core_type = #tpu.core_type<tc>, window_params = [{transform_indices = @transform_0, window_bounds = array<i64: 16, 32>}, {transform_indices = @transform_1, window_bounds = array<i64: 32, 64>}, {transform_indices = @transform_2, window_bounds = array<i64: 1, 64>}, {transform_indices = @transform_3, window_bounds = array<i64: 16, 64>}]} {
    %c0 = arith.constant 0 : index
    %c0_0 = arith.constant 0 : index
    %0 = vector.load %arg2[%c0, %c0_0] : memref<16x32xf32, #tpu.memory_space<vmem>>, vector<16x32xf32>
    %c0_1 = arith.constant 0 : index
    %c0_2 = arith.constant 0 : index
    %1 = vector.load %arg3[%c0_1, %c0_2] : memref<32x64xf32, #tpu.memory_space<vmem>>, vector<32x64xf32>
    %cst = arith.constant dense<0.000000e+00> : vector<16x64xf32>
    %2 = tpu.matmul %0, %1, %cst {dimension_numbers = #tpu.dot_dimension_numbers<[1], [0], [0], [1], [0, 0, 1, 1], [], []>} : vector<16x32xf32>, vector<32x64xf32>, vector<16x64xf32> -> vector<16x64xf32>
    %c0_3 = arith.constant 0 : index
    %c0_4 = arith.constant 0 : index
    %3 = vector.load %arg4[%c0_3, %c0_4] : memref<1x64xf32, #tpu.memory_space<vmem>>, vector<1x64xf32>
    %4 = vector.broadcast %3 : vector<1x64xf32> to vector<16x64xf32>
    %5 = arith.addf %2, %4 : vector<16x64xf32>
    %c0_5 = arith.constant 0 : index
    %c0_6 = arith.constant 0 : index
    %6 = vector.load %arg5[%c0_5, %c0_6] : memref<16x64xf32, #tpu.memory_space<vmem>>, vector<16x64xf32>
    tpu.vector_store %arg5[%c0_5, %c0_6], %5 {strides = array<i32>} : memref<16x64xf32, #tpu.memory_space<vmem>>, vector<16x64xf32>,
    return
  }
  func.func @transform_0(%arg0: i32, %arg1: i32) -> (i32, i32) {
    %c0_i32 = arith.constant 0 : i32
    %c0_i32_0 = arith.constant 0 : i32
    return %arg0, %c0_i32 : i32, i32
  }
  func.func @transform_1(%arg0: i32, %arg1: i32) -> (i32, i32) {
    %c0_i32 = arith.constant 0 : i32
    %c0_i32_0 = arith.constant 0 : i32
    return %c0_i32, %arg1 : i32, i32
  }
  func.func @transform_2(%arg0: i32, %arg1: i32) -> (i32, i32) {
    %c0_i32 = arith.constant 0 : i32
    %c0_i32_0 = arith.constant 0 : i32
    return %c0_i32, %arg1 : i32, i32
  }
  func.func @transform_3(%arg0: i32, %arg1: i32) -> (i32, i32) {
    %c0_i32 = arith.constant 0 : i32
    return %arg0, %arg1 : i32, i32
  }
}

module attributes {stable_mosaic.version = 11 : i64} {
  func.func @_ln_linear_kernel(%arg0: i32, %arg1: i32, %arg2: memref<16x32xf32, #tpu.memory_space<vmem>>, %arg3: memref<1x32xf32, #tpu.memory_space<vmem>>, %arg4: memref<1x32xf32, #tpu.memory_space<vmem>>, %arg5: memref<32x128xf32, #tpu.memory_space<vmem>>, %arg6: memref<1x128xf32, #tpu.memory_space<vmem>>, %arg7: memref<16x128xf32, #tpu.memory_space<vmem>>) attributes {dimension_semantics = [#tpu.dimension_semantics<parallel>, #tpu.dimension_semantics<parallel>], iteration_bounds = array<i64: 1, 1>, scalar_prefetch = 0 : i64, scratch_operands = 0 : i64, tpu.core_type = #tpu.core_type<tc>, window_params = [{transform_indices = @transform_0, window_bounds = array<i64: 16, 32>}, {pipeline_mode = #tpu.pipeline_mode<synchronous>, transform_indices = @transform_1, window_bounds = array<i64: 1, 32>}, {pipeline_mode = #tpu.pipeline_mode<synchronous>, transform_indices = @transform_2, window_bounds = array<i64: 1, 32>}, {transform_indices = @transform_3, window_bounds = array<i64: 32, 128>}, {transform_indices = @transform_4, window_bounds = array<i64: 1, 128>}, {transform_indices = @transform_5, window_bounds = array<i64: 16, 128>}]} {
    %c0 = arith.constant 0 : index
    %c0_0 = arith.constant 0 : index
    %0 = vector.load %arg2[%c0, %c0_0] : memref<16x32xf32, #tpu.memory_space<vmem>>, vector<16x32xf32>
    %cst = arith.constant dense<0.000000e+00> : vector<16xf32>
    %1 = vector.multi_reduction <add>, %0, %cst [1] : vector<16x32xf32> to vector<16xf32>
    %2 = vector.shape_cast %1 : vector<16xf32> to vector<16x1xf32>
    %cst_1 = arith.constant 3.200000e+01 : f32
    %3 = vector.broadcast %cst_1 : f32 to vector<16x1xf32>
    %4 = arith.divf %2, %3 : vector<16x1xf32>
    %5 = vector.broadcast %4 : vector<16x1xf32> to vector<16x32xf32>
    %6 = arith.subf %0, %5 : vector<16x32xf32>
    %7 = vector.broadcast %4 : vector<16x1xf32> to vector<16x32xf32>
    %8 = arith.subf %0, %7 : vector<16x32xf32>
    %9 = arith.mulf %6, %8 : vector<16x32xf32>
    %cst_2 = arith.constant dense<0.000000e+00> : vector<16xf32>
    %10 = vector.multi_reduction <add>, %9, %cst_2 [1] : vector<16x32xf32> to vector<16xf32>
    %11 = vector.shape_cast %10 : vector<16xf32> to vector<16x1xf32>
    %cst_3 = arith.constant 3.200000e+01 : f32
    %12 = vector.broadcast %cst_3 : f32 to vector<16x1xf32>
    %13 = arith.divf %11, %12 : vector<16x1xf32>
    %14 = vector.broadcast %4 : vector<16x1xf32> to vector<16x32xf32>
    %15 = arith.subf %0, %14 : vector<16x32xf32>
    %cst_4 = arith.constant 9.99999974E-6 : f32
    %16 = vector.broadcast %cst_4 : f32 to vector<16x1xf32>
    %17 = arith.addf %13, %16 : vector<16x1xf32>
    %18 = math.rsqrt %17 : vector<16x1xf32>
    %19 = vector.broadcast %18 : vector<16x1xf32> to vector<16x32xf32>
    %20 = arith.mulf %15, %19 : vector<16x32xf32>
    %c0_5 = arith.constant 0 : index
    %c0_6 = arith.constant 0 : index
    %21 = vector.load %arg3[%c0_5, %c0_6] : memref<1x32xf32, #tpu.memory_space<vmem>>, vector<1x32xf32>
    %22 = vector.broadcast %21 : vector<1x32xf32> to vector<16x32xf32>
    %23 = arith.mulf %20, %22 : vector<16x32xf32>
    %c0_7 = arith.constant 0 : index
    %c0_8 = arith.constant 0 : index
    %24 = vector.load %arg4[%c0_7, %c0_8] : memref<1x32xf32, #tpu.memory_space<vmem>>, vector<1x32xf32>
    %25 = vector.broadcast %24 : vector<1x32xf32> to vector<16x32xf32>
    %26 = arith.addf %23, %25 : vector<16x32xf32>
    %c0_9 = arith.constant 0 : index
    %c0_10 = arith.constant 0 : index
    %27 = vector.load %arg5[%c0_9, %c0_10] : memref<32x128xf32, #tpu.memory_space<vmem>>, vector<32x128xf32>
    %cst_11 = arith.constant dense<0.000000e+00> : vector<16x128xf32>
    %28 = tpu.matmul %26, %27, %cst_11 {dimension_numbers = #tpu.dot_dimension_numbers<[1], [0], [0], [1], [0, 0, 1, 1], [], []>} : vector<16x32xf32>, vector<32x128xf32>, vector<16x128xf32> -> vector<16x128xf32>
    %c0_12 = arith.constant 0 : index
    %c0_13 = arith.constant 0 : index
    %29 = vector.load %arg6[%c0_12, %c0_13] : memref<1x128xf32, #tpu.memory_space<vmem>>, vector<1x128xf32>
    %30 = vector.broadcast %29 : vector<1x128xf32> to vector<16x128xf32>
    %31 = arith.addf %28, %30 : vector<16x128xf32>
    %c0_14 = arith.constant 0 : index
    %c0_15 = arith.constant 0 : index
    %32 = vector.load %arg7[%c0_14, %c0_15] : memref<16x128xf32, #tpu.memory_space<vmem>>, vector<16x128xf32>
    tpu.vector_store %arg7[%c0_14, %c0_15], %31 {strides = array<i32>} : memref<16x128xf32, #tpu.memory_space<vmem>>, vector<16x128xf32>,
    return
  }
  func.func @transform_0(%arg0: i32, %arg1: i32) -> (i32, i32) {
    %c0_i32 = arith.constant 0 : i32
    %c0_i32_0 = arith.constant 0 : i32
    return %arg0, %c0_i32 : i32, i32
  }
  func.func @transform_1(%arg0: i32, %arg1: i32) -> (i32, i32) {
    %c0_i32 = arith.constant 0 : i32
    %c0_i32_0 = arith.constant 0 : i32
    %c0_i32_1 = arith.constant 0 : i32
    return %c0_i32, %c0_i32_0 : i32, i32
  }
  func.func @transform_2(%arg0: i32, %arg1: i32) -> (i32, i32) {
    %c0_i32 = arith.constant 0 : i32
    %c0_i32_0 = arith.constant 0 : i32
    %c0_i32_1 = arith.constant 0 : i32
    return %c0_i32, %c0_i32_0 : i32, i32
  }
  func.func @transform_3(%arg0: i32, %arg1: i32) -> (i32, i32) {
    %c0_i32 = arith.constant 0 : i32
    %c0_i32_0 = arith.constant 0 : i32
    return %c0_i32, %arg1 : i32, i32
  }
  func.func @transform_4(%arg0: i32, %arg1: i32) -> (i32, i32) {
    %c0_i32 = arith.constant 0 : i32
    %c0_i32_0 = arith.constant 0 : i32
    return %c0_i32, %arg1 : i32, i32
  }
  func.func @transform_5(%arg0: i32, %arg1: i32) -> (i32, i32) {
    %c0_i32 = arith.constant 0 : i32
    return %arg0, %arg1 : i32, i32
  }
}

</mosaic_0001>

<bundles_post_ra>
// kernel: seq2seq_forward.29
= control target key start
LH: loop header
LB: loop body
LE: loop exit
PB: predicated region body
PF: predicated region fallthrough
CT: control target
= control target key end

     0   :  { %vm38_vm0 = vcmask 1043456   ;;  %vm31_vm1 = vcmask 97280   ;;  %vm77_vm2 = vcmask 523264   ;;  %vm111_vm3 = vcmask 261120   ;;  %s224_s1 = inlined_call_operand.vmem [shape: f32[12,64], index: 1, kind: input, shape index: {}]   ;;  %s225_s0 = inlined_call_operand.vmem [shape: f32[16,12], index: 0, kind: input, shape index: {}]   ;;  %s226_s3 = inlined_call_operand.vmem [shape: f32[64,32], index: 3, kind: input, shape index: {}]   ;;  %s227_s2 = inlined_call_operand.vmem [shape: f32[1,64], index: 2, kind: input, shape index: {}]   ;;  %s228_s4 = inlined_call_operand.vmem [shape: f32[1,32], index: 4, kind: input, shape index: {}]   ;;  %s229_s5 = inlined_call_operand.vmem [shape: f32[16,32], index: 5, kind: input, shape index: {}]   ;;  %s230_s6 = inlined_call_operand.vmem [shape: f32[16,32], index: 6, kind: output, shape index: {}]  }
   0x1   :  { %v26_v0 = vld [vmem:[%s224_s1 + $0x8] sm:$0xf]  ;;  %v25_v1 = vld [vmem:[%s224_s1] sm:$0xff]  ;;  %v72_v3 = vld [vmem:[%s226_s3 + $0x38] sm:$0xff] }
   0x2   :  { %118 = vmatpush.msk.msra.mxu0 %vm38_vm0, %v26_v0  ;;  %v23_v2 = vld [vmem:[%s225_s0] sm:$0xff]  ;;  %v71_v4 = vld [vmem:[%s226_s3 + $0x30] sm:$0xff]  ;;  %92 = vmatpush.msra.mxu1 %v72_v3  ;;  %v70_v5 = vld [vmem:[%s226_s3 + $0x28] sm:$0xff] }
   0x3   :  { %123 = vmatpush.msra.mxu2 %v72_v3  ;;  %v69_v6 = vld [vmem:[%s226_s3 + $0x20] sm:$0xff]  ;;  %v68_v7 = vld [vmem:[%s226_s3 + $0x18] sm:$0xff]  ;;  %v24_v8 = vld [vmem:[%s225_s0 + $0x8] sm:$0xff] }
   0x4   :  { %57 = vmatpush.msra.mxu0 %v25_v1  ;;  %93 = vmatpush.msra.mxu1 %v71_v4  ;;  %v67_v9 = vld [vmem:[%s226_s3 + $0x10] sm:$0xff]  ;;  %v66_v10 = vld [vmem:[%s226_s3 + $0x8] sm:$0xff]  ;;  %v65_v11 = vld [vmem:[%s226_s3] sm:$0xff] }
   0x5   :  { %119 = vmatmul.msk.f32.vlgmr.msra.gmra.mxu0 %vm31_vm1, %v23_v2  ;;  %124 = vmatpush.msra.mxu2 %v71_v4  ;;  %v131_v12 = vld [vmem:[%s227_s2] ss:$0 sm:$0xff]  ;;  %v108_v23 = vld [vmem:[%s229_s5 + $0x8] sm:$0xff] }
   0x6   :  { %94 = vmatpush.msra.mxu1 %v70_v5  ;;  %v132_v17 = vld [vmem:[%s228_s4] ss:$0 sm:$0xff] }
   0x7   :  { %125 = vmatpush.msra.mxu2 %v70_v5  ;;  %v107_v19 = vld [vmem:[%s229_s5] sm:$0xff] }
   0x8   :  { %95 = vmatpush.msra.mxu1 %v69_v6 }
   0x9   :  { %126 = vmatpush.msra.mxu2 %v69_v6 }
   0xa   :  { %96 = vmatpush.msra.mxu1 %v68_v7 }
   0xb   :  { %127 = vmatpush.msra.mxu2 %v68_v7 }
   0xc   :  { %97 = vmatpush.msra.mxu1 %v67_v9 }
   0xd   :  { %120 = vmatmul.msk.f32.gmra.mxu0 %vm31_vm1, %v24_v8  ;;  %128 = vmatpush.msra.mxu2 %v67_v9 }
   0xe   :  { %98 = vmatpush.msra.mxu1 %v66_v10 }
   0xf   :  { %129 = vmatpush.msra.mxu2 %v66_v10 }
  0x10   :  { %99 = vmatpush.msra.mxu1 %v65_v11 }
  0x11   :  { %130 = vmatpush.msra.mxu2 %v65_v11 }
  0x82   :  { %v59_v13 = vpop.f32.mrf.mxu0 }
  0x83   :  { %v60_v14 = vadd.f32 %v131_v12, %v59_v13 }
  0x85   :  { %121 = vmatmul.msk.f32.vlgmr.msra.gmra.mxu1 %vm77_vm2, %v60_v14 }
  0x8a   :  { %v62_v15 = vpop.f32.mrf.mxu0 }
  0x8b   :  { %v63_v16 = vadd.f32 %v131_v12, %v62_v15 }
  0x8d   :  { %122 = vmatmul.msk.f32.vlgmr.msra.gmra.mxu2 %vm77_vm2, %v63_v16 }
 0x102   :  { %v101_v18 = vpop.f32.mrf.mxu1 }
 0x103   :  { %v102_v20 = vadd.f32 %v132_v17, %v101_v18 }
 0x105   :  { %v109_v21 = vadd.f32 %v107_v19, %v102_v20 }
 0x107   :  { %112 = vst.msk [vmem:[%s230_s6] sm:$0xff] %vm111_vm3, %v109_v21 }
 0x110   :  { %v104_v22 = vpop.f32.mrf.mxu2 }
 0x111   :  { %v105_v24 = vadd.f32 %v132_v17, %v104_v22 }
 0x113   :  { %v110_v25 = vadd.f32 %v108_v23, %v105_v24 }
 0x115   :  { %113 = vst.msk [vmem:[%s230_s6 + $0x8] sm:$0xff] %vm111_vm3, %v110_v25 }

// kernel: seq2seq_forward.39
= control target key start
LH: loop header
LB: loop body
LE: loop exit
PB: predicated region body
PF: predicated region fallthrough
CT: control target
= control target key end

     0   :  { %vm24_vm0 = vcmask 261120   ;;  %vm54_vm1 = vcmask 785408   ;;  %s115_s1 = inlined_call_operand.vmem [shape: f32[32,96], index: 1, kind: input, shape index: {}]   ;;  %s116_s2 = inlined_call_operand.vmem [shape: f32[1,96], index: 2, kind: input, shape index: {}]   ;;  %s117_s0 = inlined_call_operand.vmem [shape: f32[16,32], index: 0, kind: input, shape index: {}]   ;;  %s118_s3 = inlined_call_operand.vmem [shape: f32[16,96], index: 3, kind: output, shape index: {}]  }
   0x1   :  { %v19_v0 = vld [vmem:[%s115_s1 + $0x18] sm:$0xff]  ;;  %v18_v1 = vld [vmem:[%s115_s1 + $0x10] sm:$0xff]  ;;  %v17_v2 = vld [vmem:[%s115_s1 + $0x8] sm:$0xff] }
   0x2   :  { %43 = vmatpush.msra.mxu0 %v19_v0  ;;  %63 = vmatpush.msra.mxu1 %v19_v0  ;;  %v16_v3 = vld [vmem:[%s115_s1] sm:$0xff]  ;;  %v15_v5 = vld [vmem:[%s117_s0 + $0x8] sm:$0xff] }
   0x3   :  { %v14_v4 = vld [vmem:[%s117_s0] sm:$0xff] }
   0x4   :  { %44 = vmatpush.msra.mxu0 %v18_v1  ;;  %64 = vmatpush.msra.mxu1 %v18_v1  ;;  %v67_v6 = vld [vmem:[%s116_s2] ss:$0 sm:$0xff] }
   0x6   :  { %45 = vmatpush.msra.mxu0 %v17_v2  ;;  %65 = vmatpush.msra.mxu1 %v17_v2 }
   0x8   :  { %46 = vmatpush.msra.mxu0 %v16_v3  ;;  %66 = vmatpush.msra.mxu1 %v16_v3 }
   0x9   :  { %61 = vmatmul.msk.f32.vlgmr.msra.gmra.mxu0 %vm24_vm0, %v14_v4  ;;  %62 = vmatmul.msk.f32.vlgmr.msra.gmra.mxu1 %vm24_vm0, %v15_v5 }
  0x86   :  { %v48_v7 = vpop.f32.mrf.mxu0  ;;  %v51_v8 = vpop.f32.mrf.mxu1 }
  0x87   :  { %v49_v9 = vadd.f32 %v67_v6, %v48_v7  ;;  %v52_v10 = vadd.f32 %v67_v6, %v51_v8 }
  0x89   :  { %55 = vst.msk [vmem:[%s118_s3] sm:$0xff] %vm54_vm1, %v49_v9 }
  0x8a   :  { %56 = vst.msk [vmem:[%s118_s3 + $0x8] sm:$0xff] %vm54_vm1, %v52_v10 }

// kernel: seq2seq_forward.40
= control target key start
LH: loop header
LB: loop body
LE: loop exit
PB: predicated region body
PF: predicated region fallthrough
CT: control target
= control target key end

     0   :  { %s735_s18 = smov 0   ;;  %s794_s0 = inlined_call_operand.vmem [shape: f32[2,4,8,8], index: 0, kind: input, shape index: {}]   ;;  %s795_s1 = inlined_call_operand.vmem [shape: f32[2,4,8,8], index: 1, kind: input, shape index: {}]   ;;  %s796_s2 = inlined_call_operand.vmem [shape: f32[2,4,8,8], index: 2, kind: input, shape index: {}]   ;;  %s797_s3 = inlined_call_operand.vmem [shape: f32[8,8], index: 3, kind: input, shape index: {}]   ;;  %s798_s4 = inlined_call_operand.vmem [shape: f32[2,1,8], index: 4, kind: input, shape index: {}]   ;;  %s799_s5 = inlined_call_operand.vmem [shape: f32[2,4,8,8], index: 5, kind: output, shape index: {}]  }
   0x1 LB: > { %s641_s19 = sadd.s32 4294967295, %s703_s18   ;;  %p645_p0 = scmp.ge.s32.totalorder %s703_s18, 1  ;;  %s703_s18 = sphi %s735_s18, %s15_s18  }
   0x2   : > { %p215_p1 = scmp.lt.s32.totalorder %s703_s18, 3 }
   0x4   : > { %p216_p2 = pnand %p645_p0, %p215_p1 }
   0x5   : > { %p256_p3 = scmp.lt.s32.totalorder (!%p216_p2), %s641_s19, 1 }
   0x6   : > { %219 = sbr.rel (%p216_p2) target bundleno = 551 (0x227), region = 40 }
   0xb   : > { %s801_s19 = smov (!%p256_p3, %s641_s19), 1  ;;  %vm291_vm0 = vcmask 64512   ;;  %v400_v9 = vld [vmem:[%s797_s3] sm:$0xff] }
   0xc   : > { %s743_s20 = sshll.u32 %s801_s19, 5  ;;  %s273_s29 = scalar_lea.vmem %s798_s4, %s801_s19 }
   0xd   : > { %s265_s23 = scalar_lea.vmem %s795_s1, %s743_s20  ;;  %s260_s26 = scalar_lea.vmem %s794_s0, %s743_s20  ;;  %v680_v12 = vld [vmem:[%s273_s29] ss:$0 sm:$0xff] }
   0xe   : > { %v283_v0 = vld [vmem:[%s265_s23] sm:$0xff]  ;;  %v285_v1 = vld [vmem:[%s265_s23 + $0x10] sm:$0xff]  ;;  %v284_v4 = vld [vmem:[%s265_s23 + $0x8] sm:$0xff]  ;;  %s270_s9 = scalar_lea.vmem %s796_s2, %s743_s20  ;;  %s278_s12 = scalar_lea.vmem %s799_s5, %s743_s20 }
   0xf   : > { %v279_v2 = vld [vmem:[%s260_s26] sm:$0xff]  ;;  %654 = vmatpush.xpose.msk.msra.mxu0 %vm291_vm0, %v283_v0  ;;  %658 = vmatpush.xpose.msk.msra.mxu2 %vm291_vm0, %v285_v1  ;;  %v281_v3 = vld [vmem:[%s260_s26 + $0x10] sm:$0xff]  ;;  %v286_v5 = vld [vmem:[%s265_s23 + $0x18] sm:$0xff] }
  0x10   : > { %656 = vmatpush.xpose.msk.msra.mxu1 %vm291_vm0, %v284_v4  ;;  %660 = vmatpush.xpose.msk.msra.mxu3 %vm291_vm0, %v286_v5  ;;  %v280_v6 = vld [vmem:[%s260_s26 + $0x8] sm:$0xff]  ;;  %v282_v7 = vld [vmem:[%s260_s26 + $0x18] sm:$0xff]  ;;  %v287_v50 = vld [vmem:[%s270_s9] sm:$0xff] }
  0x11   : > { %v289_v51 = vld [vmem:[%s270_s9 + $0x10] sm:$0xff]  ;;  %v288_v52 = vld [vmem:[%s270_s9 + $0x8] sm:$0xff]  ;;  %v290_v53 = vld [vmem:[%s270_s9 + $0x18] sm:$0xff] }
  0x12   : > { %655 = vmatmul.msk.f32.vlgmr.msra.gmra.mxu0 %vm291_vm0, %v279_v2  ;;  %659 = vmatmul.msk.f32.vlgmr.msra.gmra.mxu2 %vm291_vm0, %v281_v3 }
  0x13   : > { %657 = vmatmul.msk.f32.vlgmr.msra.gmra.mxu1 %vm291_vm0, %v280_v6  ;;  %661 = vmatmul.msk.f32.vlgmr.msra.gmra.mxu3 %vm291_vm0, %v282_v7 }
  0x14   : > { %475 = vmatpush.msrb.mxu0 %v287_v50  ;;  %521 = vmatpush.msrb.mxu2 %v289_v51 }
  0x15   : > { %498 = vmatpush.msrb.mxu1 %v288_v52  ;;  %544 = vmatpush.msrb.mxu3 %v290_v53 }
  0x8f   : > { %v315_v8 = vpop.f32.mrf.mxu0 }
  0x90   : > { %v396_v10 = vmul.f32 0.35355338, %v315_v8  ;;  %v341_v11 = vpop.f32.mrf.mxu1 }
  0x91   : > { %v397_v13 = vmul.f32 0.35355338, %v341_v11 }
  0x92   : > { %v401_v14 = vadd.f32 %v400_v9, %v396_v10 }
  0x93   : > { %v402_v15 = vadd.f32 %v400_v9, %v397_v13 }
  0x94   : > { %v409_v16 = vadd.f32 %v680_v12, %v401_v14 }
  0x95   : > { %v367_v17 = vpop.f32.mrf.mxu2  ;;  %v410_v23 = vadd.f32 %v680_v12, %v402_v15 }
  0x96   : > { %v398_v18 = vmul.f32 0.35355338, %v367_v17  ;;  %v413_v19 = vsel %vm291_vm0, %v409_v16, -inf  ;;  %v393_v20 = vpop.f32.mrf.mxu3 }
  0x97   : > { %414 = vmax.xlane.f32.xlu1 %v413_v19  ;;  %v399_v21 = vmul.f32 0.35355338, %v393_v20  ;;  %v416_v27 = vsel %vm291_vm0, %v410_v23, -inf }
  0x98   : > { %v403_v22 = vadd.f32 %v400_v9, %v398_v18 }
  0x99   : > { %v404_v24 = vadd.f32 %v400_v9, %v399_v21 }
  0x9a   : > { %v411_v25 = vadd.f32 %v680_v12, %v403_v22 }
  0x9b   : > { %v412_v28 = vadd.f32 %v680_v12, %v404_v24 }
  0x9c   : > { %v419_v26 = vsel %vm291_vm0, %v411_v25, -inf }
  0x9d   : > { %420 = vmax.xlane.f32.xlu0 %v419_v26  ;;  %v422_v29 = vsel %vm291_vm0, %v412_v28, -inf }
  0x9f   : > { %417 = vmax.xlane.f32.xlu1 %v416_v27 }
  0xa5   : > { %423 = vmax.xlane.f32.xlu0 %v422_v29 }
 0x10a   : > { %v415_v30 = vpop.xlane.xlu1 %414 }
 0x10b   : > { %v425_v31 = vsub.f32 %v409_v16, %v415_v30 }
 0x10d   : > { %v429_v32 = vmul.f32 1.442695, %v425_v31 }
 0x10f   : > { %681 = vpow2.f32 %v429_v32 }
 0x110   : > { %v421_v33 = vpop.xlane.xlu0 %420 }
 0x111   : > { %v427_v34 = vsub.f32 %v411_v25, %v421_v33 }
 0x112   : > { %v418_v35 = vpop.xlane.xlu1 %417 }
 0x113   : > { %v433_v36 = vmul.f32 1.442695, %v427_v34  ;;  %v426_v37 = vsub.f32 %v410_v23, %v418_v35 }
 0x115   : > { %v682_v38 = vpop.eup %681  ;;  %683 = vpow2.f32 %v433_v36  ;;  %v431_v39 = vmul.f32 1.442695, %v426_v37 }
 0x116   : > { %v437_v40 = vsel %vm291_vm0, %v682_v38, 0.0 }
 0x117   : > { %685 = vpow2.f32 %v431_v39  ;;  %438 = vadd.xlane.f32.xlu0 %v437_v40 }
 0x118   : > { %v424_v41 = vpop.xlane.xlu0 %423 }
 0x119   : > { %v428_v42 = vsub.f32 %v412_v28, %v424_v41 }
 0x11b   : > { %v684_v43 = vpop.eup %683  ;;  %v435_v44 = vmul.f32 1.442695, %v428_v42 }
 0x11c   : > { %v443_v45 = vsel %vm291_vm0, %v684_v43, 0.0 }
 0x11d   : > { %v686_v46 = vpop.eup %685  ;;  %687 = vpow2.f32 %v435_v44  ;;  %444 = vadd.xlane.f32.xlu2 %v443_v45 }
 0x11e   : > { %v440_v47 = vsel %vm291_vm0, %v686_v46, 0.0 }
 0x11f   : > { %441 = vadd.xlane.f32.xlu1 %v440_v47 }
 0x123   : > { %v688_v48 = vpop.eup %687 }
 0x124   : > { %v446_v49 = vsel %vm291_vm0, %v688_v48, 0.0 }
 0x125   : > { %447 = vadd.xlane.f32.xlu2 %v446_v49 }
 0x18a   : > { %v439_v54 = vpop.xlane.xlu0 %438 }
 0x18b   : > { %689 = vrcp.f32 %v439_v54 }
 0x190   : > { %v445_v55 = vpop.xlane.xlu2 %444 }
 0x191   : > { %v690_v56 = vpop.eup %689  ;;  %691 = vrcp.f32 %v445_v55 }
 0x192   : > { %v453_v57 = vmul.f32 %v690_v56, %v682_v38  ;;  %v442_v58 = vpop.xlane.xlu1 %441 }
 0x193   : > { %693 = vrcp.f32 %v442_v58 }
 0x194   : > { %662 = vmatmul.msk.f32.vlgmr.msrb.gmra.mxu0 %vm291_vm0, %v453_v57 }
 0x197   : > { %v692_v59 = vpop.eup %691 }
 0x198   : > { %v448_v60 = vpop.xlane.xlu2 %447  ;;  %v455_v61 = vmul.f32 %v692_v59, %v684_v43 }
 0x199   : > { %v694_v62 = vpop.eup %693  ;;  %695 = vrcp.f32 %v448_v60 }
 0x19a   : > { %v454_v63 = vmul.f32 %v694_v62, %v686_v46  ;;  %664 = vmatmul.msk.f32.vlgmr.msrb.gmra.mxu2 %vm291_vm0, %v455_v61 }
 0x19c   : > { %663 = vmatmul.msk.f32.vlgmr.msrb.gmra.mxu1 %vm291_vm0, %v454_v63 }
 0x19f   : > { %v696_v0 = vpop.eup %695 }
 0x1a0   : > { %v456_v1 = vmul.f32 %v696_v0, %v688_v48 }
 0x1a2   : > { %665 = vmatmul.msk.f32.vlgmr.msrb.gmra.mxu3 %vm291_vm0, %v456_v1 }
 0x211   : > { %v477_v2 = vpop.f32.mrf.mxu0 }
 0x212   : > { %549 = vst.msk [vmem:[%s278_s12] sm:$0xff] %vm291_vm0, %v477_v2 }
 0x219   : > { %v500_v3 = vpop.f32.mrf.mxu1 }
 0x21a   : > { %550 = vst.msk [vmem:[%s278_s12 + $0x8] sm:$0xff] %vm291_vm0, %v500_v3 }
 0x21d   : > { %v523_v4 = vpop.f32.mrf.mxu2 }
 0x21e   : > { %551 = vst.msk [vmem:[%s278_s12 + $0x10] sm:$0xff] %vm291_vm0, %v523_v4 }
 0x225   : > { %v546_v5 = vpop.f32.mrf.mxu3 }
 0x226   : > { %552 = vst.msk [vmem:[%s278_s12 + $0x18] sm:$0xff] %vm291_vm0, %v546_v5 }
 0x227 PF: > { %s15_s18 = sadd.s32 1, %s703_s18  }
 0x228   : > { %p12_p4 = scmp.ge.s32.totalorder %s15_s18, 4  }
 0x22a   :  { %14 = sbr.rel (!%p12_p4) target bundleno = 1 (0x1), region = 79 }

// kernel: seq2seq_forward.41
= control target key start
LH: loop header
LB: loop body
LE: loop exit
PB: predicated region body
PF: predicated region fallthrough
CT: control target
= control target key end

     0   :  { %vm33_vm0 = vcmask 261120   ;;  %v152_v17 = vmov 32.0   ;;  %s235_s2 = inlined_call_operand.vmem [shape: f32[32,32], index: 2, kind: input, shape index: {}]   ;;  %s236_s3 = inlined_call_operand.vmem [shape: f32[1,32], index: 3, kind: input, shape index: {}]   ;;  %s237_s0 = inlined_call_operand.vmem [shape: f32[16,32], index: 0, kind: input, shape index: {}]   ;;  %s238_s1 = inlined_call_operand.vmem [shape: f32[16,32], index: 1, kind: input, shape index: {}]   ;;  %s239_s4 = inlined_call_operand.vmem [shape: f32[1,32], index: 4, kind: input, shape index: {}]   ;;  %s240_s5 = inlined_call_operand.vmem [shape: f32[1,32], index: 5, kind: input, shape index: {}]   ;;  %s241_s6 = inlined_call_operand.vmem [shape: f32[16,32], index: 6, kind: output, shape index: {}]  }
   0x1   :  { %v28_v0 = vld [vmem:[%s235_s2 + $0x18] sm:$0xff]  ;;  %v27_v1 = vld [vmem:[%s235_s2 + $0x10] sm:$0xff]  ;;  %v26_v2 = vld [vmem:[%s235_s2 + $0x8] sm:$0xff]  ;;  %146 = vrcp.f32 %v152_v17 }
   0x2   :  { %52 = vmatpush.msra.mxu0 %v28_v0  ;;  %138 = vmatpush.msra.mxu1 %v28_v0  ;;  %v25_v3 = vld [vmem:[%s235_s2] sm:$0xff]  ;;  %v24_v5 = vld [vmem:[%s237_s0 + $0x8] sm:$0xff] }
   0x3   :  { %v23_v4 = vld [vmem:[%s237_s0] sm:$0xff]  ;;  %v64_v13 = vld [vmem:[%s238_s1 + $0x8] sm:$0xff] }
   0x4   :  { %53 = vmatpush.msra.mxu0 %v27_v1  ;;  %139 = vmatpush.msra.mxu1 %v27_v1  ;;  %v143_v6 = vld [vmem:[%s236_s3] ss:$0 sm:$0xff] }
   0x5   :  { %v63_v8 = vld [vmem:[%s238_s1] sm:$0xff] }
   0x6   :  { %54 = vmatpush.msra.mxu0 %v26_v2  ;;  %140 = vmatpush.msra.mxu1 %v26_v2  ;;  %v144_v48 = vld [vmem:[%s239_s4] ss:$0 sm:$0xff] }
   0x7   :  { %v147_v18 = vpop.eup %146  ;;  %v145_v51 = vld [vmem:[%s240_s5] ss:$0 sm:$0xff] }
   0x8   :  { %55 = vmatpush.msra.mxu0 %v25_v3  ;;  %141 = vmatpush.msra.mxu1 %v25_v3  ;;  %v74_v19 = vmul.f32 32.0, %v147_v18  ;;  %vm78_vm1 = vweird.f32 %v147_v18 }
   0x9   :  { %136 = vmatmul.msk.f32.vlgmr.msra.gmra.mxu0 %vm33_vm0, %v23_v4  ;;  %137 = vmatmul.msk.f32.vlgmr.msra.gmra.mxu1 %vm33_vm0, %v24_v5 }
   0xa   :  { %v75_v20 = vsub.f32 1.0, %v74_v19 }
   0xc   :  { %v76_v21 = vmul.f32 %v147_v18, %v75_v20 }
   0xe   :  { %v77_v22 = vadd.f32 %v147_v18, %v76_v21 }
  0x10   :  { %v79_v23 = vsel %vm78_vm1, %v147_v18, %v77_v22 }
  0x86   :  { %v57_v7 = vpop.f32.mrf.mxu0  ;;  %v60_v9 = vpop.f32.mrf.mxu1 }
  0x87   :  { %v58_v10 = vadd.f32 %v143_v6, %v57_v7  ;;  %v61_v12 = vadd.f32 %v143_v6, %v60_v9 }
  0x89   :  { %v65_v11 = vadd.f32 %v63_v8, %v58_v10  ;;  %v66_v15 = vadd.f32 %v64_v13, %v61_v12 }
  0x8b   :  { %v67_v14 = vsel %vm33_vm0, %v65_v11, 0.0  ;;  %v70_v16 = vsel %vm33_vm0, %v66_v15, 0.0 }
  0x8c   :  { %68 = vadd.xlane.f32.xlu0 %v67_v14 }
  0x94   :  { %71 = vadd.xlane.f32.xlu0 %v70_v16 }
  0xff   :  { %v69_v24 = vpop.xlane.xlu0 %68 }
 0x100   :  { %v80_v25 = vmul.f32 %v79_v23, %v69_v24 }
 0x102   :  { %v82_v26 = vsub.f32 %v65_v11, %v80_v25 }
 0x104   :  { %v84_v27 = vmul.f32 %v82_v26, %v82_v26 }
 0x106   :  { %v86_v28 = vsel %vm33_vm0, %v84_v27, 0.0 }
 0x107   :  { %87 = vadd.xlane.f32.xlu1 %v86_v28  ;;  %v72_v29 = vpop.xlane.xlu0 %71 }
 0x108   :  { %v81_v30 = vmul.f32 %v79_v23, %v72_v29 }
 0x10a   :  { %v83_v31 = vsub.f32 %v66_v15, %v81_v30 }
 0x10c   :  { %v85_v32 = vmul.f32 %v83_v31, %v83_v31 }
 0x10e   :  { %v89_v33 = vsel %vm33_vm0, %v85_v32, 0.0 }
 0x10f   :  { %90 = vadd.xlane.f32.xlu1 %v89_v33 }
 0x17a   :  { %v88_v34 = vpop.xlane.xlu1 %87 }
 0x17b   :  { %v92_v35 = vmul.f32 %v88_v34, %v79_v23 }
 0x17d   :  { %v94_v36 = vadd.f32 1e-05, %v92_v35 }
 0x17f   :  { %148 = vrsqrt.f32 %v94_v36  ;;  %vm102_vm3 = vweird.f32 %v94_v36 }
 0x182   :  { %v91_v37 = vpop.xlane.xlu1 %90 }
 0x183   :  { %v93_v38 = vmul.f32 %v91_v37, %v79_v23 }
 0x185   :  { %v149_v39 = vpop.eup %148  ;;  %v95_v40 = vadd.f32 1e-05, %v93_v38 }
 0x186   :  { %v97_v41 = vmul.f32 %v149_v39, %v94_v36  ;;  %vm103_vm2 = vweird.f32 %v149_v39 }
 0x187   :  { %150 = vrsqrt.f32 %v95_v40  ;;  %vm104_vm4 = vmor %vm102_vm3, %vm103_vm2  ;;  %vm112_vm6 = vweird.f32 %v95_v40 }
 0x188   :  { %v98_v42 = vmul.f32 %v149_v39, %v97_v41 }
 0x18a   :  { %v99_v43 = vmul.f32 0.5, %v98_v42 }
 0x18c   :  { %v100_v44 = vsub.f32 1.5, %v99_v43 }
 0x18d   :  { %v151_v45 = vpop.eup %150 }
 0x18e   :  { %v101_v46 = vmul.f32 %v149_v39, %v100_v44  ;;  %v107_v47 = vmul.f32 %v151_v45, %v95_v40  ;;  %vm113_vm5 = vweird.f32 %v151_v45 }
 0x18f   :  { %vm114_vm7 = vmor %vm112_vm6, %vm113_vm5 }
 0x190   :  { %v105_v49 = vsel %vm104_vm4, %v149_v39, %v101_v46  ;;  %v108_v50 = vmul.f32 %v151_v45, %v107_v47 }
 0x191   :  { %v116_v52 = vmul.f32 %v105_v49, %v82_v26 }
 0x192   :  { %v109_v53 = vmul.f32 0.5, %v108_v50 }
 0x193   :  { %v122_v54 = vmul.f32 %v144_v48, %v116_v52 }
 0x194   :  { %v110_v55 = vsub.f32 1.5, %v109_v53 }
 0x195   :  { %v128_v56 = vadd.f32 %v145_v51, %v122_v54 }
 0x196   :  { %v111_v57 = vmul.f32 %v151_v45, %v110_v55 }
 0x197   :  { %130 = vst.msk [vmem:[%s241_s6] sm:$0xff] %vm33_vm0, %v128_v56 }
 0x198   :  { %v115_v58 = vsel %vm114_vm7, %v151_v45, %v111_v57 }
 0x199   :  { %v117_v59 = vmul.f32 %v115_v58, %v83_v31 }
 0x19b   :  { %v123_v60 = vmul.f32 %v144_v48, %v117_v59 }
 0x19d   :  { %v129_v61 = vadd.f32 %v145_v51, %v123_v60 }
 0x19f   :  { %131 = vst.msk [vmem:[%s241_s6 + $0x8] sm:$0xff] %vm33_vm0, %v129_v61 }

// kernel: seq2seq_forward.42
= control target key start
LH: loop header
LB: loop body
LE: loop exit
PB: predicated region body
PF: predicated region fallthrough
CT: control target
= control target key end

     0   :  { %vm24_vm0 = vcmask 261120   ;;  %s114_s1 = inlined_call_operand.vmem [shape: f32[32,32], index: 1, kind: input, shape index: {}]   ;;  %s115_s2 = inlined_call_operand.vmem [shape: f32[1,32], index: 2, kind: input, shape index: {}]   ;;  %s116_s0 = inlined_call_operand.vmem [shape: f32[16,32], index: 0, kind: input, shape index: {}]   ;;  %s117_s3 = inlined_call_operand.vmem [shape: f32[16,32], index: 3, kind: output, shape index: {}]  }
   0x1   :  { %v19_v0 = vld [vmem:[%s114_s1 + $0x18] sm:$0xff]  ;;  %v18_v1 = vld [vmem:[%s114_s1 + $0x10] sm:$0xff]  ;;  %v17_v2 = vld [vmem:[%s114_s1 + $0x8] sm:$0xff] }
   0x2   :  { %43 = vmatpush.msra.mxu0 %v19_v0  ;;  %62 = vmatpush.msra.mxu1 %v19_v0  ;;  %v16_v3 = vld [vmem:[%s114_s1] sm:$0xff]  ;;  %v15_v5 = vld [vmem:[%s116_s0 + $0x8] sm:$0xff] }
   0x3   :  { %v14_v4 = vld [vmem:[%s116_s0] sm:$0xff] }
   0x4   :  { %44 = vmatpush.msra.mxu0 %v18_v1  ;;  %63 = vmatpush.msra.mxu1 %v18_v1  ;;  %v66_v6 = vld [vmem:[%s115_s2] ss:$0 sm:$0xff] }
   0x6   :  { %45 = vmatpush.msra.mxu0 %v17_v2  ;;  %64 = vmatpush.msra.mxu1 %v17_v2 }
   0x8   :  { %46 = vmatpush.msra.mxu0 %v16_v3  ;;  %65 = vmatpush.msra.mxu1 %v16_v3 }
   0x9   :  { %60 = vmatmul.msk.f32.vlgmr.msra.gmra.mxu0 %vm24_vm0, %v14_v4  ;;  %61 = vmatmul.msk.f32.vlgmr.msra.gmra.mxu1 %vm24_vm0, %v15_v5 }
  0x86   :  { %v48_v7 = vpop.f32.mrf.mxu0  ;;  %v51_v8 = vpop.f32.mrf.mxu1 }
  0x87   :  { %v49_v9 = vadd.f32 %v66_v6, %v48_v7  ;;  %v52_v10 = vadd.f32 %v66_v6, %v51_v8 }
  0x89   :  { %54 = vst.msk [vmem:[%s117_s3] sm:$0xff] %vm24_vm0, %v49_v9 }
  0x8a   :  { %55 = vst.msk [vmem:[%s117_s3 + $0x8] sm:$0xff] %vm24_vm0, %v52_v10 }

// kernel: seq2seq_forward.33
= control target key start
LH: loop header
LB: loop body
LE: loop exit
PB: predicated region body
PF: predicated region fallthrough
CT: control target
= control target key end

     0   :  { %vm36_vm0 = vcmask 261120   ;;  %vm80_vm1 = vcmask 523264   ;;  %v208_v30 = vmov 32.0   ;;  %s317_s1 = inlined_call_operand.vmem [shape: f32[32,64], index: 1, kind: input, shape index: {}]   ;;  %s318_s3 = inlined_call_operand.vmem [shape: f32[64,32], index: 3, kind: input, shape index: {}]   ;;  %s319_s0 = inlined_call_operand.vmem [shape: f32[16,32], index: 0, kind: input, shape index: {}]   ;;  %s320_s2 = inlined_call_operand.vmem [shape: f32[1,64], index: 2, kind: input, shape index: {}]   ;;  %s321_s4 = inlined_call_operand.vmem [shape: f32[1,32], index: 4, kind: input, shape index: {}]   ;;  %s322_s5 = inlined_call_operand.vmem [shape: f32[1,32], index: 5, kind: input, shape index: {}]   ;;  %s323_s6 = inlined_call_operand.vmem [shape: f32[1,32], index: 6, kind: input, shape index: {}]   ;;  %s324_s7 = inlined_call_operand.vmem [shape: f32[16,32], index: 7, kind: output, shape index: {}]  }
   0x1   :  { %v31_v0 = vld [vmem:[%s317_s1 + $0x18] sm:$0xff]  ;;  %v30_v1 = vld [vmem:[%s317_s1 + $0x10] sm:$0xff]  ;;  %v29_v2 = vld [vmem:[%s317_s1 + $0x8] sm:$0xff]  ;;  %202 = vrcp.f32 %v208_v30 }
   0x2   :  { %55 = vmatpush.msra.mxu0 %v31_v0  ;;  %185 = vmatpush.msra.mxu3 %v31_v0  ;;  %v75_v3 = vld [vmem:[%s318_s3 + $0x38] sm:$0xff]  ;;  %v74_v4 = vld [vmem:[%s318_s3 + $0x30] sm:$0xff]  ;;  %v28_v5 = vld [vmem:[%s317_s1] sm:$0xff] }
   0x3   :  { %95 = vmatpush.msra.mxu1 %v75_v3  ;;  %189 = vmatpush.msra.mxu2 %v75_v3  ;;  %v26_v6 = vld [vmem:[%s319_s0] sm:$0xff]  ;;  %v27_v7 = vld [vmem:[%s319_s0 + $0x8] sm:$0xff]  ;;  %v71_v10 = vld [vmem:[%s318_s3 + $0x18] sm:$0xff] }
   0x4   :  { %56 = vmatpush.msra.mxu0 %v30_v1  ;;  %186 = vmatpush.msra.mxu3 %v30_v1  ;;  %v73_v8 = vld [vmem:[%s318_s3 + $0x28] sm:$0xff]  ;;  %v72_v9 = vld [vmem:[%s318_s3 + $0x20] sm:$0xff]  ;;  %v70_v11 = vld [vmem:[%s318_s3 + $0x10] sm:$0xff] }
   0x5   :  { %96 = vmatpush.msra.mxu1 %v74_v4  ;;  %190 = vmatpush.msra.mxu2 %v74_v4  ;;  %v69_v12 = vld [vmem:[%s318_s3 + $0x8] sm:$0xff]  ;;  %v68_v13 = vld [vmem:[%s318_s3] sm:$0xff] }
   0x6   :  { %57 = vmatpush.msra.mxu0 %v29_v2  ;;  %187 = vmatpush.msra.mxu3 %v29_v2  ;;  %v198_v14 = vld [vmem:[%s320_s2] ss:$0 sm:$0xff] }
   0x7   :  { %97 = vmatpush.msra.mxu1 %v73_v8  ;;  %191 = vmatpush.msra.mxu2 %v73_v8  ;;  %v199_v21 = vld [vmem:[%s321_s4] ss:$0 sm:$0xff]  ;;  %v203_v31 = vpop.eup %202 }
   0x8   :  { %58 = vmatpush.msra.mxu0 %v28_v5  ;;  %188 = vmatpush.msra.mxu3 %v28_v5  ;;  %v119_v32 = vmul.f32 32.0, %v203_v31  ;;  %vm123_vm2 = vweird.f32 %v203_v31  ;;  %v200_v59 = vld [vmem:[%s322_s5] ss:$0 sm:$0xff] }
   0x9   :  { %181 = vmatmul.msk.f32.vlgmr.msra.gmra.mxu0 %vm36_vm0, %v26_v6  ;;  %182 = vmatmul.msk.f32.vlgmr.msra.gmra.mxu3 %vm36_vm0, %v27_v7  ;;  %v201_v62 = vld [vmem:[%s323_s6] ss:$0 sm:$0xff] }
   0xa   :  { %98 = vmatpush.msra.mxu1 %v72_v9  ;;  %192 = vmatpush.msra.mxu2 %v72_v9  ;;  %v120_v33 = vsub.f32 1.0, %v119_v32 }
   0xc   :  { %99 = vmatpush.msra.mxu1 %v71_v10  ;;  %193 = vmatpush.msra.mxu2 %v71_v10  ;;  %v121_v34 = vmul.f32 %v203_v31, %v120_v33 }
   0xe   :  { %100 = vmatpush.msra.mxu1 %v70_v11  ;;  %194 = vmatpush.msra.mxu2 %v70_v11  ;;  %v122_v35 = vadd.f32 %v203_v31, %v121_v34 }
  0x10   :  { %101 = vmatpush.msra.mxu1 %v69_v12  ;;  %195 = vmatpush.msra.mxu2 %v69_v12  ;;  %v124_v36 = vsel %vm123_vm2, %v203_v31, %v122_v35 }
  0x12   :  { %102 = vmatpush.msra.mxu1 %v68_v13  ;;  %196 = vmatpush.msra.mxu2 %v68_v13 }
  0x86   :  { %v60_v15 = vpop.f32.mrf.mxu0 }
  0x87   :  { %v61_v16 = vadd.f32 %v198_v14, %v60_v15 }
  0x89   :  { %v66_v17 = vmax.f32 %v61_v16, 0.0 }
  0x8b   :  { %183 = vmatmul.msk.f32.vlgmr.msra.gmra.mxu1 %vm80_vm1, %v66_v17 }
  0x8c   :  { %v63_v18 = vpop.f32.mrf.mxu3 }
  0x8d   :  { %v64_v19 = vadd.f32 %v198_v14, %v63_v18 }
  0x8f   :  { %v67_v20 = vmax.f32 %v64_v19, 0.0 }
  0x91   :  { %184 = vmatmul.msk.f32.vlgmr.msra.gmra.mxu2 %vm80_vm1, %v67_v20 }
 0x108   :  { %v104_v22 = vpop.f32.mrf.mxu1 }
 0x109   :  { %v105_v23 = vadd.f32 %v199_v21, %v104_v22 }
 0x10b   :  { %v110_v24 = vadd.f32 %v105_v23, %v26_v6 }
 0x10d   :  { %v112_v25 = vsel %vm36_vm0, %v110_v24, 0.0 }
 0x10e   :  { %113 = vadd.xlane.f32.xlu0 %v112_v25 }
 0x114   :  { %v107_v26 = vpop.f32.mrf.mxu2 }
 0x115   :  { %v108_v27 = vadd.f32 %v199_v21, %v107_v26 }
 0x117   :  { %v111_v28 = vadd.f32 %v108_v27, %v27_v7 }
 0x119   :  { %v115_v29 = vsel %vm36_vm0, %v111_v28, 0.0 }
 0x11a   :  { %116 = vadd.xlane.f32.xlu0 %v115_v29 }
 0x181   :  { %v114_v37 = vpop.xlane.xlu0 %113 }
 0x182   :  { %v125_v38 = vmul.f32 %v124_v36, %v114_v37 }
 0x184   :  { %v127_v39 = vsub.f32 %v110_v24, %v125_v38 }
 0x186   :  { %v129_v40 = vmul.f32 %v127_v39, %v127_v39 }
 0x188   :  { %v131_v41 = vsel %vm36_vm0, %v129_v40, 0.0 }
 0x189   :  { %132 = vadd.xlane.f32.xlu1 %v131_v41 }
 0x18d   :  { %v117_v42 = vpop.xlane.xlu0 %116 }
 0x18e   :  { %v126_v43 = vmul.f32 %v124_v36, %v117_v42 }
 0x190   :  { %v128_v44 = vsub.f32 %v111_v28, %v126_v43 }
 0x192   :  { %v130_v45 = vmul.f32 %v128_v44, %v128_v44 }
 0x194   :  { %v134_v46 = vsel %vm36_vm0, %v130_v45, 0.0 }
 0x195   :  { %135 = vadd.xlane.f32.xlu1 %v134_v46 }
 0x1fc   :  { %v133_v47 = vpop.xlane.xlu1 %132 }
 0x1fd   :  { %v137_v48 = vmul.f32 %v133_v47, %v124_v36 }
 0x1ff   :  { %v139_v49 = vadd.f32 1e-05, %v137_v48 }
 0x201   :  { %204 = vrsqrt.f32 %v139_v49  ;;  %vm147_vm4 = vweird.f32 %v139_v49 }
 0x207   :  { %v205_v50 = vpop.eup %204 }
 0x208   :  { %v142_v51 = vmul.f32 %v205_v50, %v139_v49  ;;  %v136_v52 = vpop.xlane.xlu1 %135  ;;  %vm148_vm3 = vweird.f32 %v205_v50 }
 0x209   :  { %v138_v53 = vmul.f32 %v136_v52, %v124_v36  ;;  %vm149_vm5 = vmor %vm147_vm4, %vm148_vm3 }
 0x20a   :  { %v143_v54 = vmul.f32 %v205_v50, %v142_v51 }
 0x20b   :  { %v140_v55 = vadd.f32 1e-05, %v138_v53 }
 0x20c   :  { %v144_v56 = vmul.f32 0.5, %v143_v54 }
 0x20d   :  { %206 = vrsqrt.f32 %v140_v55  ;;  %vm157_vm7 = vweird.f32 %v140_v55 }
 0x20e   :  { %v145_v57 = vsub.f32 1.5, %v144_v56 }
 0x210   :  { %v146_v58 = vmul.f32 %v205_v50, %v145_v57 }
 0x212   :  { %v150_v60 = vsel %vm149_vm5, %v205_v50, %v146_v58 }
 0x213   :  { %v207_v61 = vpop.eup %206  ;;  %v161_v63 = vmul.f32 %v150_v60, %v127_v39 }
 0x214   :  { %v152_v0 = vmul.f32 %v207_v61, %v140_v55  ;;  %vm158_vm6 = vweird.f32 %v207_v61 }
 0x215   :  { %v167_v1 = vmul.f32 %v200_v59, %v161_v63  ;;  %vm159_vm8 = vmor %vm157_vm7, %vm158_vm6 }
 0x216   :  { %v153_v2 = vmul.f32 %v207_v61, %v152_v0 }
 0x217   :  { %v173_v3 = vadd.f32 %v201_v62, %v167_v1 }
 0x218   :  { %v154_v4 = vmul.f32 0.5, %v153_v2 }
 0x219   :  { %175 = vst.msk [vmem:[%s324_s7] sm:$0xff] %vm36_vm0, %v173_v3 }
 0x21a   :  { %v155_v5 = vsub.f32 1.5, %v154_v4 }
 0x21c   :  { %v156_v6 = vmul.f32 %v207_v61, %v155_v5 }
 0x21e   :  { %v160_v7 = vsel %vm159_vm8, %v207_v61, %v156_v6 }
 0x21f   :  { %v162_v8 = vmul.f32 %v160_v7, %v128_v44 }
 0x221   :  { %v168_v9 = vmul.f32 %v200_v59, %v162_v8 }
 0x223   :  { %v174_v10 = vadd.f32 %v201_v62, %v168_v9 }
 0x225   :  { %176 = vst.msk [vmem:[%s324_s7 + $0x8] sm:$0xff] %vm36_vm0, %v174_v10 }

// kernel: seq2seq_forward.38
= control target key start
LH: loop header
LB: loop body
LE: loop exit
PB: predicated region body
PF: predicated region fallthrough
CT: control target
= control target key end

     0   :  { %vm16_vm0 = vcmask 261120   ;;  %v95_v4 = vmov 32.0   ;;  %s140_s0 = inlined_call_operand.vmem [shape: f32[16,32], index: 0, kind: input, shape index: {}]   ;;  %s141_s1 = inlined_call_operand.vmem [shape: f32[1,32], index: 1, kind: input, shape index: {}]   ;;  %s142_s2 = inlined_call_operand.vmem [shape: f32[1,32], index: 2, kind: input, shape index: {}]   ;;  %s143_s3 = inlined_call_operand.vmem [shape: f32[16,32], index: 3, kind: output, shape index: {}]  }
   0x1   :  { %v14_v0 = vld [vmem:[%s140_s0] sm:$0xff]  ;;  %v15_v2 = vld [vmem:[%s140_s0 + $0x8] sm:$0xff]  ;;  %89 = vrcp.f32 %v95_v4 }
   0x2   :  { %v17_v1 = vsel %vm16_vm0, %v14_v0, 0.0  ;;  %v20_v3 = vsel %vm16_vm0, %v15_v2, 0.0  ;;  %v87_v35 = vld [vmem:[%s141_s1] ss:$0 sm:$0xff] }
   0x3   :  { %18 = vadd.xlane.f32.xlu0 %v17_v1  ;;  %v88_v38 = vld [vmem:[%s142_s2] ss:$0 sm:$0xff] }
   0x7   :  { %v90_v5 = vpop.eup %89 }
   0x8   :  { %v24_v6 = vmul.f32 32.0, %v90_v5  ;;  %vm28_vm1 = vweird.f32 %v90_v5 }
   0xa   :  { %v25_v7 = vsub.f32 1.0, %v24_v6 }
   0xb   :  { %21 = vadd.xlane.f32.xlu0 %v20_v3 }
   0xc   :  { %v26_v8 = vmul.f32 %v90_v5, %v25_v7 }
   0xe   :  { %v27_v9 = vadd.f32 %v90_v5, %v26_v8 }
  0x10   :  { %v29_v10 = vsel %vm28_vm1, %v90_v5, %v27_v9 }
  0x76   :  { %v19_v11 = vpop.xlane.xlu0 %18 }
  0x77   :  { %v30_v12 = vmul.f32 %v29_v10, %v19_v11 }
  0x79   :  { %v32_v13 = vsub.f32 %v14_v0, %v30_v12 }
  0x7b   :  { %v34_v14 = vmul.f32 %v32_v13, %v32_v13 }
  0x7d   :  { %v36_v15 = vsel %vm16_vm0, %v34_v14, 0.0 }
  0x7e   :  { %37 = vadd.xlane.f32.xlu1 %v36_v15  ;;  %v22_v16 = vpop.xlane.xlu0 %21 }
  0x7f   :  { %v31_v17 = vmul.f32 %v29_v10, %v22_v16 }
  0x81   :  { %v33_v18 = vsub.f32 %v15_v2, %v31_v17 }
  0x83   :  { %v35_v19 = vmul.f32 %v33_v18, %v33_v18 }
  0x85   :  { %v39_v20 = vsel %vm16_vm0, %v35_v19, 0.0 }
  0x86   :  { %40 = vadd.xlane.f32.xlu1 %v39_v20 }
  0xf1   :  { %v38_v21 = vpop.xlane.xlu1 %37 }
  0xf2   :  { %v42_v22 = vmul.f32 %v38_v21, %v29_v10 }
  0xf4   :  { %v44_v23 = vadd.f32 1e-05, %v42_v22 }
  0xf6   :  { %91 = vrsqrt.f32 %v44_v23  ;;  %vm52_vm3 = vweird.f32 %v44_v23 }
  0xf9   :  { %v41_v24 = vpop.xlane.xlu1 %40 }
  0xfa   :  { %v43_v25 = vmul.f32 %v41_v24, %v29_v10 }
  0xfc   :  { %v92_v26 = vpop.eup %91  ;;  %v45_v27 = vadd.f32 1e-05, %v43_v25 }
  0xfd   :  { %v47_v28 = vmul.f32 %v92_v26, %v44_v23  ;;  %vm53_vm2 = vweird.f32 %v92_v26 }
  0xfe   :  { %93 = vrsqrt.f32 %v45_v27  ;;  %vm54_vm4 = vmor %vm52_vm3, %vm53_vm2  ;;  %vm62_vm6 = vweird.f32 %v45_v27 }
  0xff   :  { %v48_v29 = vmul.f32 %v92_v26, %v47_v28 }
 0x101   :  { %v49_v30 = vmul.f32 0.5, %v48_v29 }
 0x103   :  { %v50_v31 = vsub.f32 1.5, %v49_v30 }
 0x104   :  { %v94_v32 = vpop.eup %93 }
 0x105   :  { %v51_v33 = vmul.f32 %v92_v26, %v50_v31  ;;  %v57_v34 = vmul.f32 %v94_v32, %v45_v27  ;;  %vm63_vm5 = vweird.f32 %v94_v32 }
 0x106   :  { %vm64_vm7 = vmor %vm62_vm6, %vm63_vm5 }
 0x107   :  { %v55_v36 = vsel %vm54_vm4, %v92_v26, %v51_v33  ;;  %v58_v37 = vmul.f32 %v94_v32, %v57_v34 }
 0x108   :  { %v66_v39 = vmul.f32 %v55_v36, %v32_v13 }
 0x109   :  { %v59_v40 = vmul.f32 0.5, %v58_v37 }
 0x10a   :  { %v72_v41 = vmul.f32 %v87_v35, %v66_v39 }
 0x10b   :  { %v60_v42 = vsub.f32 1.5, %v59_v40 }
 0x10c   :  { %v78_v43 = vadd.f32 %v88_v38, %v72_v41 }
 0x10d   :  { %v61_v44 = vmul.f32 %v94_v32, %v60_v42 }
 0x10e   :  { %80 = vst.msk [vmem:[%s143_s3] sm:$0xff] %vm16_vm0, %v78_v43 }
 0x10f   :  { %v65_v45 = vsel %vm64_vm7, %v94_v32, %v61_v44 }
 0x110   :  { %v67_v46 = vmul.f32 %v65_v45, %v33_v18 }
 0x112   :  { %v73_v47 = vmul.f32 %v87_v35, %v67_v46 }
 0x114   :  { %v79_v48 = vadd.f32 %v88_v38, %v73_v47 }
 0x116   :  { %81 = vst.msk [vmem:[%s143_s3 + $0x8] sm:$0xff] %vm16_vm0, %v79_v48 }

// kernel: seq2seq_forward.43
= control target key start
LH: loop header
LB: loop body
LE: loop exit
PB: predicated region body
PF: predicated region fallthrough
CT: control target
= control target key end

     0   :  { %vm24_vm0 = vcmask 261120   ;;  %vm54_vm1 = vcmask 523264   ;;  %s115_s1 = inlined_call_operand.vmem [shape: f32[32,64], index: 1, kind: input, shape index: {}]   ;;  %s116_s2 = inlined_call_operand.vmem [shape: f32[1,64], index: 2, kind: input, shape index: {}]   ;;  %s117_s0 = inlined_call_operand.vmem [shape: f32[16,32], index: 0, kind: input, shape index: {}]   ;;  %s118_s3 = inlined_call_operand.vmem [shape: f32[16,64], index: 3, kind: output, shape index: {}]  }
   0x1   :  { %v19_v0 = vld [vmem:[%s115_s1 + $0x18] sm:$0xff]  ;;  %v18_v1 = vld [vmem:[%s115_s1 + $0x10] sm:$0xff]  ;;  %v17_v2 = vld [vmem:[%s115_s1 + $0x8] sm:$0xff] }
   0x2   :  { %43 = vmatpush.msra.mxu0 %v19_v0  ;;  %63 = vmatpush.msra.mxu1 %v19_v0  ;;  %v16_v3 = vld [vmem:[%s115_s1] sm:$0xff]  ;;  %v15_v5 = vld [vmem:[%s117_s0 + $0x8] sm:$0xff] }
   0x3   :  { %v14_v4 = vld [vmem:[%s117_s0] sm:$0xff] }
   0x4   :  { %44 = vmatpush.msra.mxu0 %v18_v1  ;;  %64 = vmatpush.msra.mxu1 %v18_v1  ;;  %v67_v6 = vld [vmem:[%s116_s2] ss:$0 sm:$0xff] }
   0x6   :  { %45 = vmatpush.msra.mxu0 %v17_v2  ;;  %65 = vmatpush.msra.mxu1 %v17_v2 }
   0x8   :  { %46 = vmatpush.msra.mxu0 %v16_v3  ;;  %66 = vmatpush.msra.mxu1 %v16_v3 }
   0x9   :  { %61 = vmatmul.msk.f32.vlgmr.msra.gmra.mxu0 %vm24_vm0, %v14_v4  ;;  %62 = vmatmul.msk.f32.vlgmr.msra.gmra.mxu1 %vm24_vm0, %v15_v5 }
  0x86   :  { %v48_v7 = vpop.f32.mrf.mxu0  ;;  %v51_v8 = vpop.f32.mrf.mxu1 }
  0x87   :  { %v49_v9 = vadd.f32 %v67_v6, %v48_v7  ;;  %v52_v10 = vadd.f32 %v67_v6, %v51_v8 }
  0x89   :  { %55 = vst.msk [vmem:[%s118_s3] sm:$0xff] %vm54_vm1, %v49_v9 }
  0x8a   :  { %56 = vst.msk [vmem:[%s118_s3 + $0x8] sm:$0xff] %vm54_vm1, %v52_v10 }

// kernel: seq2seq_forward.55
= control target key start
LH: loop header
LB: loop body
LE: loop exit
PB: predicated region body
PF: predicated region fallthrough
CT: control target
= control target key end

     0   :  { %vm23_vm0 = vcmask 261120   ;;  %s259_s0 = inlined_call_operand.vmem [shape: f32[16,32], index: 0, kind: input, shape index: {}]   ;;  %s260_s1 = inlined_call_operand.vmem [shape: f32[1,32], index: 1, kind: input, shape index: {}]   ;;  %s261_s2 = inlined_call_operand.vmem [shape: f32[1,32], index: 2, kind: input, shape index: {}]   ;;  %s262_s3 = inlined_call_operand.vmem [shape: f32[32,128], index: 3, kind: input, shape index: {}]   ;;  %s263_s4 = inlined_call_operand.vmem [shape: f32[1,128], index: 4, kind: input, shape index: {}]   ;;  %s264_s5 = inlined_call_operand.hbm [shape: f32[16,128], index: 5, kind: output, shape index: {}]  }
   0x1   :  { %v21_v0 = vld [vmem:[%s259_s0] sm:$0xff] }
   0x2   :  { %v24_v1 = vsel %vm23_vm0, %v21_v0, 0.0 }
   0x3   :  { %25 = vadd.xlane.f32.xlu0 %v24_v1 }
   0x4   :  { %10 = vsyncpa [#allocation3], 0  ;;  %v22_v2 = vld [vmem:[%s259_s0 + $0x8] sm:$0xff]  ;;  %v189_v4 = vmov 32.0   ;;  %v90_v21 = vld [vmem:[%s262_s3 + $0x18] sm:$0xff]  ;;  %s132_s11 = sshll.u32 %s264_s5, 4  ;;  %s133_s11 = int_to_ptr.hbm [resolvable:$true] %s132_s11 }
   0x5   :  { %v27_v3 = vsel %vm23_vm0, %v22_v2, 0.0  ;;  %157 = vrcp.f32 %v189_v4  ;;  %113 = vmatpush.msra.mxu0 %v90_v21  ;;  %146 = vmatpush.msra.mxu1 %v90_v21  ;;  %v89_v22 = vld [vmem:[%s262_s3 + $0x10] sm:$0xff]  ;;  %v88_v23 = vld [vmem:[%s262_s3 + $0x8] sm:$0xff]  ;;  %v87_v24 = vld [vmem:[%s262_s3] sm:$0xff]  ;;  %s191_s12 = smov 128   ;;  %s192_s13 = smov 8  }
   0x6   :  { %v154_v39 = vld [vmem:[%s260_s1] ss:$0 sm:$0xff] }
   0x7   :  { %114 = vmatpush.msra.mxu0 %v89_v22  ;;  %147 = vmatpush.msra.mxu1 %v89_v22  ;;  %v155_v43 = vld [vmem:[%s261_s2] ss:$0 sm:$0xff]  ;;  %s190_s2 = smov [#allocation2]  }
   0x8   :  { %v156_v53 = vld [vmem:[%s263_s4] ss:$0 sm:$0xff]  ;;  %s130_s8 = sshll.u32 %s190_s2, 4  ;;  %s131_s8 = int_to_ptr.vmem [resolvable:$true] %s130_s8 }
   0x9   :  { %115 = vmatpush.msra.mxu0 %v88_v23  ;;  %148 = vmatpush.msra.mxu1 %v88_v23 }
   0xb   :  { %28 = vadd.xlane.f32.xlu0 %v27_v3  ;;  %v158_v5 = vpop.eup %157  ;;  %116 = vmatpush.msra.mxu0 %v87_v24 }
   0xc   :  { %v31_v6 = vmul.f32 32.0, %v158_v5  ;;  %vm35_vm1 = vweird.f32 %v158_v5  ;;  %149 = vmatpush.msra.mxu1 %v87_v24 }
   0xe   :  { %v32_v7 = vsub.f32 1.0, %v31_v6 }
  0x10   :  { %v33_v8 = vmul.f32 %v158_v5, %v32_v7 }
  0x12   :  { %v34_v9 = vadd.f32 %v158_v5, %v33_v8 }
  0x14   :  { %v36_v10 = vsel %vm35_vm1, %v158_v5, %v34_v9 }
  0x76   :  { %v26_v11 = vpop.xlane.xlu0 %25 }
  0x77   :  { %v37_v12 = vmul.f32 %v36_v10, %v26_v11 }
  0x79   :  { %v39_v13 = vsub.f32 %v21_v0, %v37_v12 }
  0x7b   :  { %v41_v14 = vmul.f32 %v39_v13, %v39_v13 }
  0x7d   :  { %v43_v15 = vsel %vm23_vm0, %v41_v14, 0.0 }
  0x7e   :  { %44 = vadd.xlane.f32.xlu1 %v43_v15  ;;  %v29_v16 = vpop.xlane.xlu0 %28 }
  0x7f   :  { %v38_v17 = vmul.f32 %v36_v10, %v29_v16 }
  0x81   :  { %v40_v18 = vsub.f32 %v22_v2, %v38_v17 }
  0x83   :  { %v42_v19 = vmul.f32 %v40_v18, %v40_v18 }
  0x85   :  { %v46_v20 = vsel %vm23_vm0, %v42_v19, 0.0 }
  0x86   :  { %47 = vadd.xlane.f32.xlu1 %v46_v20 }
  0xf1   :  { %v45_v25 = vpop.xlane.xlu1 %44 }
  0xf2   :  { %v49_v26 = vmul.f32 %v45_v25, %v36_v10 }
  0xf4   :  { %v51_v27 = vadd.f32 1e-05, %v49_v26 }
  0xf6   :  { %159 = vrsqrt.f32 %v51_v27  ;;  %vm59_vm3 = vweird.f32 %v51_v27 }
  0xf9   :  { %v48_v28 = vpop.xlane.xlu1 %47 }
  0xfa   :  { %v50_v29 = vmul.f32 %v48_v28, %v36_v10 }
  0xfc   :  { %v160_v30 = vpop.eup %159  ;;  %v52_v31 = vadd.f32 1e-05, %v50_v29 }
  0xfd   :  { %v54_v32 = vmul.f32 %v160_v30, %v51_v27  ;;  %vm60_vm2 = vweird.f32 %v160_v30 }
  0xfe   :  { %161 = vrsqrt.f32 %v52_v31  ;;  %vm61_vm4 = vmor %vm59_vm3, %vm60_vm2  ;;  %vm69_vm6 = vweird.f32 %v52_v31 }
  0xff   :  { %v55_v33 = vmul.f32 %v160_v30, %v54_v32 }
 0x101   :  { %v56_v34 = vmul.f32 0.5, %v55_v33 }
 0x103   :  { %v57_v35 = vsub.f32 1.5, %v56_v34 }
 0x104   :  { %v162_v36 = vpop.eup %161 }
 0x105   :  { %v58_v37 = vmul.f32 %v160_v30, %v57_v35  ;;  %v64_v38 = vmul.f32 %v162_v36, %v52_v31  ;;  %vm70_vm5 = vweird.f32 %v162_v36 }
 0x106   :  { %vm71_vm7 = vmor %vm69_vm6, %vm70_vm5 }
 0x107   :  { %v62_v40 = vsel %vm61_vm4, %v160_v30, %v58_v37  ;;  %v65_v41 = vmul.f32 %v162_v36, %v64_v38 }
 0x108   :  { %v73_v42 = vmul.f32 %v62_v40, %v39_v13 }
 0x109   :  { %v66_v44 = vmul.f32 0.5, %v65_v41 }
 0x10a   :  { %v79_v45 = vmul.f32 %v154_v39, %v73_v42 }
 0x10b   :  { %v67_v46 = vsub.f32 1.5, %v66_v44 }
 0x10c   :  { %v85_v47 = vadd.f32 %v155_v43, %v79_v45 }
 0x10d   :  { %v68_v48 = vmul.f32 %v162_v36, %v67_v46 }
 0x10e   :  { %144 = vmatmul.msk.f32.vlgmr.msra.gmra.mxu0 %vm23_vm0, %v85_v47 }
 0x10f   :  { %v72_v49 = vsel %vm71_vm7, %v162_v36, %v68_v48 }
 0x110   :  { %v74_v50 = vmul.f32 %v72_v49, %v40_v18 }
 0x112   :  { %v80_v51 = vmul.f32 %v154_v39, %v74_v50 }
 0x114   :  { %v86_v52 = vadd.f32 %v155_v43, %v80_v51 }
 0x116   :  { %145 = vmatmul.msk.f32.vlgmr.msra.gmra.mxu1 %vm23_vm0, %v86_v52 }
 0x18b   :  { %v118_v54 = vpop.f32.mrf.mxu0 }
 0x18c   :  { %v119_v55 = vadd.f32 %v156_v53, %v118_v54 }
 0x18e   :  { %124 = vst [vmem:[#allocation2] sm:$0xff] %v119_v55 }
 0x193   :  { %v121_v56 = vpop.f32.mrf.mxu1 }
 0x194   :  { %v122_v57 = vadd.f32 %v156_v53, %v121_v56 }
 0x196   :  { %125 = vst [vmem:[#allocation2 + $0x8] sm:$0xff] %v122_v57 }
 0x197   :  { %138 = dma.vmem_to_hbm [thread:$0]  %s131_s8, 256, %s133_s11, [#allocation3], %s191_s12, %s191_s12, %s192_s13  }
 0x198   :  { %187 = dma.done.wait [#allocation3], 256  }
 0x199   :  { %188 = vsyncadd [#allocation3], 4294967040 }
 0x19a   :  { %143 = vsyncpa [#allocation3], 1 }

</bundles_post_ra>
